<compile_context>
chip_gen: v7x
topology: tpu7x:2x2x1
jax: 0.10.0
libtpu: 0.0.40
codegen_flags: <defaults>
</compile_context>

<pallas_src>
import functools

import jax
import jax.numpy as jnp
from jax import lax
from jax.experimental import pallas as pl
from jax.experimental.pallas import tpu as pltpu

_INV_SQRT2 = 0.7071067811865476
_LN_EPS = 1e-12
_MASK_NEG = -1e9


def _pick_tile(dim, preferred, multiple):
    """Largest tile <= preferred that divides `dim` and is a multiple of
    `multiple`; falls back to the full dimension (always legal)."""
    if dim <= preferred:
        return dim
    t = (preferred // multiple) * multiple
    while t >= multiple:
        if dim % t == 0:
            return t
        t -= multiple
    return dim


# ----------------------- dense (weight-stationary GEMM) ---------------------

def _dense_kernel(x_ref, w_ref, b_ref, o_ref, *, activation):
    # Full-K single block: no k-phase, no accumulator scratch.
    y = jnp.dot(x_ref[...], w_ref[...], preferred_element_type=jnp.float32)
    y = y + b_ref[...]                                  # f32 epilogue
    if activation == "relu":
        y = jnp.maximum(y, 0.0)
    elif activation == "gelu":
        # exact (erf) GELU — matches torch.nn.functional.gelu default
        y = 0.5 * y * (1.0 + lax.erf(y * _INV_SQRT2))
    o_ref[...] = y.astype(o_ref.dtype)


def dense(x, w, b, activation=None, out_dtype=jnp.bfloat16, tm_pref=256):
    """y = act(x @ w + b); x:(M,K) bf16, w:(K,N) bf16 (VMEM-resident), b:(N,)."""
    M, K = x.shape
    N = w.shape[1]
    tm = _pick_tile(M, tm_pref, 16)
    return pl.pallas_call(
        functools.partial(_dense_kernel, activation=activation),
        grid=(M // tm,),
        in_specs=[
            pl.BlockSpec((tm, K), lambda i: (i, 0)),       # streamed activation
            pl.BlockSpec((K, N), lambda i: (0, 0)),        # weight: resident
            pl.BlockSpec((1, N), lambda i: (0, 0)),
        ],
        out_specs=pl.BlockSpec((tm, N), lambda i: (i, 0)),
        out_shape=jax.ShapeDtypeStruct((M, N), out_dtype),
        compiler_params=pltpu.CompilerParams(
            dimension_semantics=("parallel",)),
    )(x, w, b.reshape(1, N).astype(jnp.float32))


# ----------------- fused QKV GEMM with head-major output --------------------

def _dense_qkv_kernel(x_ref, w_ref, b_ref, o_ref, *, n_chunks, dh):
    y = jnp.dot(x_ref[...], w_ref[...], preferred_element_type=jnp.float32)
    y = y + b_ref[...]
    # Split the (tm, 3H) result into head-major (3*n_heads, tm, Dh) once here,
    # so the attention kernel gets lane-dense (S, Dh) tiles via BlockSpec.
    for c in range(n_chunks):
        o_ref[c] = y[:, c * dh:(c + 1) * dh].astype(o_ref.dtype)


def dense_qkv(x, w, b, n_chunks, out_dtype=jnp.bfloat16, tm_pref=256):
    """x:(M,H) @ w:(H,3H) + b, emitted head-major as (3*n_heads, M, Dh)."""
    M, K = x.shape
    N = w.shape[1]
    dh = N // n_chunks
    tm = _pick_tile(M, tm_pref, 16)
    return pl.pallas_call(
        functools.partial(_dense_qkv_kernel, n_chunks=n_chunks, dh=dh),
        grid=(M // tm,),
        in_specs=[
            pl.BlockSpec((tm, K), lambda i: (i, 0)),
            pl.BlockSpec((K, N), lambda i: (0, 0)),        # weight: resident
            pl.BlockSpec((1, N), lambda i: (0, 0)),
        ],
        out_specs=pl.BlockSpec((n_chunks, tm, dh), lambda i: (0, i, 0)),
        out_shape=jax.ShapeDtypeStruct((n_chunks, M, dh), out_dtype),
        compiler_params=pltpu.CompilerParams(
            dimension_semantics=("parallel",)),
    )(x, w, b.reshape(1, N).astype(jnp.float32))


# ------------- grouped dense + residual + LayerNorm (fused epilogue) --------

def _dense_ln_kernel(x_ref, w_ref, b_ref, r_ref, g_ref, bb_ref, o_ref,
                     *, eps, n_groups):
    # y = sum_g x[g] @ w[g] + b + res ; then LayerNorm over the last axis.
    y = b_ref[...] + r_ref[...].astype(jnp.float32)
    for g in range(n_groups):
        y = y + jnp.dot(x_ref[g], w_ref[g], preferred_element_type=jnp.float32)
    mean = jnp.mean(y, axis=-1, keepdims=True)
    c = y - mean
    var = jnp.mean(c * c, axis=-1, keepdims=True)
    yn = c * lax.rsqrt(var + eps)
    o_ref[...] = (yn * g_ref[...] + bb_ref[...]).astype(o_ref.dtype)


def dense_add_layernorm(x3, w3, b, res, gamma, beta, eps=_LN_EPS,
                        out_dtype=jnp.bfloat16, tm_pref=256):
    """LayerNorm(sum_g x3[g] @ w3[g] + b + res); x3:(G,M,Kg), w3:(G,Kg,N)
    resident in VMEM, res:(M,N). For the attention output G=n_heads, Kg=Dh
    (head permutation folded into w_o's row order); for FFN-down G=1, Kg=FFN."""
    G, M, Kg = x3.shape
    N = w3.shape[2]
    tm = _pick_tile(M, tm_pref, 16)
    return pl.pallas_call(
        functools.partial(_dense_ln_kernel, eps=eps, n_groups=G),
        grid=(M // tm,),
        in_specs=[
            pl.BlockSpec((G, tm, Kg), lambda i: (0, i, 0)),
            pl.BlockSpec((G, Kg, N), lambda i: (0, 0, 0)),  # weight: resident
            pl.BlockSpec((1, N), lambda i: (0, 0)),
            pl.BlockSpec((tm, N), lambda i: (i, 0)),        # residual stream
            pl.BlockSpec((1, N), lambda i: (0, 0)),
            pl.BlockSpec((1, N), lambda i: (0, 0)),
        ],
        out_specs=pl.BlockSpec((tm, N), lambda i: (i, 0)),
        out_shape=jax.ShapeDtypeStruct((M, N), out_dtype),
        compiler_params=pltpu.CompilerParams(
            dimension_semantics=("parallel",)),
    )(x3, w3, b.reshape(1, N).astype(jnp.float32), res,
      gamma.reshape(1, N).astype(jnp.float32),
      beta.reshape(1, N).astype(jnp.float32))


# --------------------- add + LayerNorm (embeddings only) --------------------

def _add_ln_kernel(x_ref, r_ref, g_ref, b_ref, o_ref, *, eps):
    x = x_ref[...].astype(jnp.float32) + r_ref[...].astype(jnp.float32)
    mean = jnp.mean(x, axis=-1, keepdims=True)
    c = x - mean
    var = jnp.mean(c * c, axis=-1, keepdims=True)
    y = c * lax.rsqrt(var + eps)
    o_ref[...] = (y * g_ref[...] + b_ref[...]).astype(o_ref.dtype)


def add_layernorm(x, res, gamma, beta, eps=_LN_EPS, out_dtype=jnp.bfloat16,
                  tm_pref=512):
    M, H = x.shape
    tm = _pick_tile(M, tm_pref, 16)
    return pl.pallas_call(
        functools.partial(_add_ln_kernel, eps=eps),
        grid=(M // tm,),
        in_specs=[
            pl.BlockSpec((tm, H), lambda i: (i, 0)),
            pl.BlockSpec((tm, H), lambda i: (i, 0)),
            pl.BlockSpec((1, H), lambda i: (0, 0)),
            pl.BlockSpec((1, H), lambda i: (0, 0)),
        ],
        out_specs=pl.BlockSpec((tm, H), lambda i: (i, 0)),
        out_shape=jax.ShapeDtypeStruct((M, H), out_dtype),
        compiler_params=pltpu.CompilerParams(
            dimension_semantics=("parallel",)),
    )(x, res, gamma.reshape(1, H).astype(jnp.float32),
      beta.reshape(1, H).astype(jnp.float32))


# --------------------------------- attention ---------------------------------

def _attention_kernel(bias_ref, q_ref, k_ref, v_ref, o_ref, *, scale):
    # One (batch, head) pair per grid step; q/k/v are lane-dense (S, Dh) tiles
    # DMA'd straight from the head-major QKV activation.
    q = q_ref[...]
    k = k_ref[...]
    v = v_ref[...]
    s = lax.dot_general(q, k, (((1,), (1,)), ((), ())),
                        preferred_element_type=jnp.float32)
    s = s * scale + bias_ref[...]                      # additive mask bias
    s = s - jnp.max(s, axis=-1, keepdims=True)
    p = jnp.exp(s)
    p = p * pl.reciprocal(jnp.sum(p, axis=-1, keepdims=True), approx=True)
    ctx = jnp.dot(p.astype(v.dtype), v, preferred_element_type=jnp.float32)
    o_ref[...] = ctx.astype(o_ref.dtype)


def attention(qkv_hm, mask, B, S, n_heads):
    """qkv_hm: (3*n_heads, B*S, Dh) head-major fused projection; mask: (B, S).
    Returns head-major context (n_heads, B*S, Dh)."""
    GH, M, Dh = qkv_hm.shape
    assert GH == 3 * n_heads and M == B * S
    scale = 1.0 / float(Dh) ** 0.5
    # Precompute additive bias (0 for keep, -1e9 for pad) — no per-element
    # compare+select inside the kernel.
    bias = ((1.0 - mask.astype(jnp.float32)) * _MASK_NEG).reshape(B, 1, S)
    nh = n_heads
    return pl.pallas_call(
        functools.partial(_attention_kernel, scale=scale),
        grid=(B, n_heads),
        in_specs=[
            pl.BlockSpec((None, 1, S), lambda b, h: (b, 0, 0)),
            pl.BlockSpec((None, S, Dh), lambda b, h: (h, b, 0)),          # Q
            pl.BlockSpec((None, S, Dh), lambda b, h: (nh + h, b, 0)),     # K
            pl.BlockSpec((None, S, Dh), lambda b, h: (2 * nh + h, b, 0)), # V
        ],
        out_specs=pl.BlockSpec((None, S, Dh), lambda b, h: (h, b, 0)),
        out_shape=jax.ShapeDtypeStruct((n_heads, M, Dh), jnp.bfloat16),
        compiler_params=pltpu.CompilerParams(
            dimension_semantics=("parallel", "parallel")),
    )(bias, qkv_hm, qkv_hm, qkv_hm)


# ------------------------------ model (glue) --------------------------------

def init_params(key, vocab, max_pos, hidden, n_layers, n_heads, ffn, n_classes):
    dh = hidden // n_heads
    keys = jax.random.split(key, 4 + n_layers)

    def lin(k, fan_in, fan_out):
        kw, kb = jax.random.split(k)
        w = (jax.random.normal(kw, (fan_in, fan_out), jnp.float32) * 0.02
             ).astype(jnp.bfloat16)                      # bf16 weights (MXU)
        b = jax.random.normal(kb, (fan_out,), jnp.float32) * 0.02
        return w, b

    params = {
        "word_emb": jax.random.normal(keys[0], (vocab, hidden), jnp.float32) * 0.02,
        "pos_emb": jax.random.normal(keys[1], (max_pos, hidden), jnp.float32) * 0.02,
        "emb_ln_g": jnp.ones((hidden,), jnp.float32),
        "emb_ln_b": jnp.zeros((hidden,), jnp.float32),
        "layers": [],
    }
    for l in range(n_layers):
        ks = jax.random.split(keys[2 + l], 6)
        p = {}
        wq, bq = lin(ks[0], hidden, hidden)
        wk, bk = lin(ks[1], hidden, hidden)
        wv, bv = lin(ks[2], hidden, hidden)
        # Fused QKV weight; columns are already head-major within each of
        # Q / K / V (head h occupies cols h*Dh:(h+1)*Dh).
        p["w_qkv"] = jnp.concatenate([wq, wk, wv], axis=1)   # (H, 3H)
        p["b_qkv"] = jnp.concatenate([bq, bk, bv], axis=0)   # (3H,)
        wo, bo = lin(ks[3], hidden, hidden)
        # Head permutation folded into w_o's row order: (n_heads, Dh, H).
        p["wo3"] = wo.reshape(n_heads, dh, hidden)
        p["bo"] = bo
        p["ln1_g"] = jnp.ones((hidden,), jnp.float32)
        p["ln1_b"] = jnp.zeros((hidden,), jnp.float32)
        p["w1"], p["b1"] = lin(ks[4], hidden, ffn)
        w2, b2 = lin(ks[5], ffn, hidden)
        p["w2_3"] = w2.reshape(1, ffn, hidden)               # single group
        p["b2"] = b2
        p["ln2_g"] = jnp.ones((hidden,), jnp.float32)
        p["ln2_b"] = jnp.zeros((hidden,), jnp.float32)
        params["layers"].append(p)
    kp, kc = jax.random.split(keys[2 + n_layers])
    params["pre_w"], params["pre_b"] = lin(kp, hidden, hidden)
    params["cls_w"], params["cls_b"] = lin(kc, hidden, n_classes)
    return params


def transformer_layer(x, mask, p, B, S, n_heads):
    # x: (B*S, H) bf16 hidden state
    qkv = dense_qkv(x, p["w_qkv"], p["b_qkv"], n_chunks=3 * n_heads)
    ctx = attention(qkv, mask, B, S, n_heads)               # (n_heads, B*S, Dh)
    sa = dense_add_layernorm(ctx, p["wo3"], p["bo"],         # wo + res + LN1
                             x, p["ln1_g"], p["ln1_b"])
    h = dense(sa, p["w1"], p["b1"], activation="gelu")       # FFN up + GELU
    h3 = h.reshape(1, h.shape[0], h.shape[1])                # metadata only
    return dense_add_layernorm(h3, p["w2_3"], p["b2"],       # FFN down + LN2
                               sa, p["ln2_g"], p["ln2_b"])


def text_classifier_forward(params, input_ids, attention_mask, n_heads):
    B, S = input_ids.shape
    H = params["word_emb"].shape[1]

    if attention_mask is None:
        attention_mask = jnp.ones_like(input_ids)

    # TODO(synk): embedding gather stays in plain JAX (data-dependent gather);
    # add + LayerNorm run in Pallas.
    we = params["word_emb"][input_ids].reshape(B * S, H)
    pe = jnp.broadcast_to(params["pos_emb"][:S][None, :, :],
                          (B, S, H)).reshape(B * S, H)
    x = add_layernorm(we, pe, params["emb_ln_g"], params["emb_ln_b"])  # bf16

    for p in params["layers"]:
        x = transformer_layer(x, attention_mask, p, B, S, n_heads)

    # Pooled / classifier head in plain JAX per review (M=B, N=num_classes is
    # tiny; a Pallas kernel here would only emit 4-lane masked stores).
    hidden = x.reshape(B, S, H)
    pooled = hidden[:, 0, :].astype(jnp.float32)                  # CLS token
    pooled = jnp.maximum(
        pooled @ params["pre_w"].astype(jnp.float32) + params["pre_b"], 0.0)
    logits = pooled @ params["cls_w"].astype(jnp.float32) + params["cls_b"]
    return logits                                                 # (B, classes)


# ---------------------------------- main ------------------------------------

if __name__ == "__main__":
    B, S = 2, 8
    VOCAB, MAX_POS = 100, 64
    HIDDEN, N_LAYERS, N_HEADS, FFN, N_CLASSES = 32, 2, 2, 64, 4

    key = jax.random.PRNGKey(0)
    pkey, ikey = jax.random.split(key)
    params = init_params(pkey, VOCAB, MAX_POS, HIDDEN, N_LAYERS, N_HEADS,
                         FFN, N_CLASSES)

    input_ids = jax.random.randint(ikey, (B, S), 0, VOCAB, dtype=jnp.int32)
    attention_mask = jnp.ones((B, S), jnp.int32).at[1, 6:].set(0)  # pad tail

    fwd = jax.jit(functools.partial(text_classifier_forward, n_heads=N_HEADS))
    logits = fwd(params, input_ids, attention_mask)
    jax.block_until_ready(logits)
    assert logits.shape == (B, N_CLASSES)
    assert bool(jnp.all(jnp.isfinite(logits)))
    print("KERNEL_OK")
</pallas_src>

<mosaic_0001>
module attributes {stable_mosaic.version = 11 : i64} {
  func.func @_add_ln_kernel(%arg0: i32, %arg1: memref<16x32xf32, #tpu.memory_space<vmem>>, %arg2: memref<16x32xf32, #tpu.memory_space<vmem>>, %arg3: memref<1x32xf32, #tpu.memory_space<vmem>>, %arg4: memref<1x32xf32, #tpu.memory_space<vmem>>, %arg5: memref<16x32xbf16, #tpu.memory_space<vmem>>) attributes {dimension_semantics = [#tpu.dimension_semantics<parallel>], iteration_bounds = array<i64: 1>, scalar_prefetch = 0 : i64, scratch_operands = 0 : i64, tpu.core_type = #tpu.core_type<tc>, window_params = [{transform_indices = @transform_0, window_bounds = array<i64: 16, 32>}, {transform_indices = @transform_1, window_bounds = array<i64: 16, 32>}, {pipeline_mode = #tpu.pipeline_mode<synchronous>, transform_indices = @transform_2, window_bounds = array<i64: 1, 32>}, {pipeline_mode = #tpu.pipeline_mode<synchronous>, transform_indices = @transform_3, window_bounds = array<i64: 1, 32>}, {transform_indices = @transform_4, window_bounds = array<i64: 16, 32>}]} {
    %c0 = arith.constant 0 : index
    %c0_0 = arith.constant 0 : index
    %0 = vector.load %arg1[%c0, %c0_0] : memref<16x32xf32, #tpu.memory_space<vmem>>, vector<16x32xf32>
    %c0_1 = arith.constant 0 : index
    %c0_2 = arith.constant 0 : index
    %1 = vector.load %arg2[%c0_1, %c0_2] : memref<16x32xf32, #tpu.memory_space<vmem>>, vector<16x32xf32>
    %2 = arith.addf %0, %1 : vector<16x32xf32>
    %cst = arith.constant dense<0.000000e+00> : vector<16xf32>
    %3 = vector.multi_reduction <add>, %2, %cst [1] : vector<16x32xf32> to vector<16xf32>
    %4 = vector.shape_cast %3 : vector<16xf32> to vector<16x1xf32>
    %cst_3 = arith.constant 3.200000e+01 : f32
    %5 = vector.broadcast %cst_3 : f32 to vector<16x1xf32>
    %6 = arith.divf %4, %5 : vector<16x1xf32>
    %7 = vector.broadcast %6 : vector<16x1xf32> to vector<16x32xf32>
    %8 = arith.subf %2, %7 : vector<16x32xf32>
    %9 = arith.mulf %8, %8 : vector<16x32xf32>
    %cst_4 = arith.constant dense<0.000000e+00> : vector<16xf32>
    %10 = vector.multi_reduction <add>, %9, %cst_4 [1] : vector<16x32xf32> to vector<16xf32>
    %11 = vector.shape_cast %10 : vector<16xf32> to vector<16x1xf32>
    %cst_5 = arith.constant 3.200000e+01 : f32
    %12 = vector.broadcast %cst_5 : f32 to vector<16x1xf32>
    %13 = arith.divf %11, %12 : vector<16x1xf32>
    %cst_6 = arith.constant 9.99999996E-13 : f32
    %14 = vector.broadcast %cst_6 : f32 to vector<16x1xf32>
    %15 = arith.addf %13, %14 : vector<16x1xf32>
    %16 = math.rsqrt %15 : vector<16x1xf32>
    %17 = vector.broadcast %16 : vector<16x1xf32> to vector<16x32xf32>
    %18 = arith.mulf %8, %17 : vector<16x32xf32>
    %c0_7 = arith.constant 0 : index
    %c0_8 = arith.constant 0 : index
    %19 = vector.load %arg3[%c0_7, %c0_8] : memref<1x32xf32, #tpu.memory_space<vmem>>, vector<1x32xf32>
    %20 = vector.broadcast %19 : vector<1x32xf32> to vector<16x32xf32>
    %21 = arith.mulf %18, %20 : vector<16x32xf32>
    %c0_9 = arith.constant 0 : index
    %c0_10 = arith.constant 0 : index
    %22 = vector.load %arg4[%c0_9, %c0_10] : memref<1x32xf32, #tpu.memory_space<vmem>>, vector<1x32xf32>
    %23 = vector.broadcast %22 : vector<1x32xf32> to vector<16x32xf32>
    %24 = arith.addf %21, %23 : vector<16x32xf32>
    %25 = arith.truncf %24 : vector<16x32xf32> to vector<16x32xbf16>
    %c0_11 = arith.constant 0 : index
    %c0_12 = arith.constant 0 : index
    %26 = vector.load %arg5[%c0_11, %c0_12] : memref<16x32xbf16, #tpu.memory_space<vmem>>, vector<16x32xbf16>
    tpu.vector_store %arg5[%c0_11, %c0_12], %25 {strides = array<i32>} : memref<16x32xbf16, #tpu.memory_space<vmem>>, vector<16x32xbf16>,
    return
  }
  func.func @transform_0(%arg0: i32) -> (i32, i32) {
    %c0_i32 = arith.constant 0 : i32
    %c0_i32_0 = arith.constant 0 : i32
    return %arg0, %c0_i32 : i32, i32
  }
  func.func @transform_1(%arg0: i32) -> (i32, i32) {
    %c0_i32 = arith.constant 0 : i32
    %c0_i32_0 = arith.constant 0 : i32
    return %arg0, %c0_i32 : i32, i32
  }
  func.func @transform_2(%arg0: i32) -> (i32, i32) {
    %c0_i32 = arith.constant 0 : i32
    %c0_i32_0 = arith.constant 0 : i32
    %c0_i32_1 = arith.constant 0 : i32
    return %c0_i32, %c0_i32_0 : i32, i32
  }
  func.func @transform_3(%arg0: i32) -> (i32, i32) {
    %c0_i32 = arith.constant 0 : i32
    %c0_i32_0 = arith.constant 0 : i32
    %c0_i32_1 = arith.constant 0 : i32
    return %c0_i32, %c0_i32_0 : i32, i32
  }
  func.func @transform_4(%arg0: i32) -> (i32, i32) {
    %c0_i32 = arith.constant 0 : i32
    %c0_i32_0 = arith.constant 0 : i32
    return %arg0, %c0_i32 : i32, i32
  }
}

module attributes {stable_mosaic.version = 11 : i64} {
  func.func @_dense_qkv_kernel(%arg0: i32, %arg1: memref<16x32xbf16, #tpu.memory_space<vmem>>, %arg2: memref<32x96xbf16, #tpu.memory_space<vmem>>, %arg3: memref<1x96xf32, #tpu.memory_space<vmem>>, %arg4: memref<6x16x16xbf16, #tpu.memory_space<vmem>>) attributes {dimension_semantics = [#tpu.dimension_semantics<parallel>], iteration_bounds = array<i64: 1>, scalar_prefetch = 0 : i64, scratch_operands = 0 : i64, tpu.core_type = #tpu.core_type<tc>, window_params = [{transform_indices = @transform_0, window_bounds = array<i64: 16, 32>}, {pipeline_mode = #tpu.pipeline_mode<synchronous>, transform_indices = @transform_1, window_bounds = array<i64: 32, 96>}, {pipeline_mode = #tpu.pipeline_mode<synchronous>, transform_indices = @transform_2, window_bounds = array<i64: 1, 96>}, {transform_indices = @transform_3, window_bounds = array<i64: 6, 16, 16>}]} {
    %c0 = arith.constant 0 : index
    %c0_0 = arith.constant 0 : index
    %0 = vector.load %arg1[%c0, %c0_0] : memref<16x32xbf16, #tpu.memory_space<vmem>>, vector<16x32xbf16>
    %c0_1 = arith.constant 0 : index
    %c0_2 = arith.constant 0 : index
    %1 = vector.load %arg2[%c0_1, %c0_2] : memref<32x96xbf16, #tpu.memory_space<vmem>>, vector<32x96xbf16>
    %cst = arith.constant dense<0.000000e+00> : vector<16x96xf32>
    %2 = tpu.matmul %0, %1, %cst {dimension_numbers = #tpu.dot_dimension_numbers<[1], [0], [0], [1], [0, 0, 1, 1], [], []>} : vector<16x32xbf16>, vector<32x96xbf16>, vector<16x96xf32> -> vector<16x96xf32>
    %c0_3 = arith.constant 0 : index
    %c0_4 = arith.constant 0 : index
    %3 = vector.load %arg3[%c0_3, %c0_4] : memref<1x96xf32, #tpu.memory_space<vmem>>, vector<1x96xf32>
    %4 = vector.broadcast %3 : vector<1x96xf32> to vector<16x96xf32>
    %5 = arith.addf %2, %4 : vector<16x96xf32>
    %6 = vector.extract_strided_slice %5 {offsets = [0, 0], sizes = [16, 16], strides = [1, 1]} : vector<16x96xf32> to vector<16x16xf32>
    %7 = arith.truncf %6 : vector<16x16xf32> to vector<16x16xbf16>
    %c0_5 = arith.constant 0 : index
    %c0_6 = arith.constant 0 : index
    %c0_7 = arith.constant 0 : index
    %8 = vector.load %arg4[%c0_5, %c0_6, %c0_7] : memref<6x16x16xbf16, #tpu.memory_space<vmem>>, vector<1x16x16xbf16>
    %9 = vector.shape_cast %8 : vector<1x16x16xbf16> to vector<16x16xbf16>
    %10 = vector.shape_cast %7 : vector<16x16xbf16> to vector<1x16x16xbf16>
    tpu.vector_store %arg4[%c0_5, %c0_6, %c0_7], %10 {strides = array<i32>} : memref<6x16x16xbf16, #tpu.memory_space<vmem>>, vector<1x16x16xbf16>,
    %11 = vector.extract_strided_slice %5 {offsets = [0, 16], sizes = [16, 16], strides = [1, 1]} : vector<16x96xf32> to vector<16x16xf32>
    %12 = arith.truncf %11 : vector<16x16xf32> to vector<16x16xbf16>
    %c1 = arith.constant 1 : index
    %c0_8 = arith.constant 0 : index
    %c0_9 = arith.constant 0 : index
    %13 = vector.load %arg4[%c1, %c0_8, %c0_9] : memref<6x16x16xbf16, #tpu.memory_space<vmem>>, vector<1x16x16xbf16>
    %14 = vector.shape_cast %13 : vector<1x16x16xbf16> to vector<16x16xbf16>
    %15 = vector.shape_cast %12 : vector<16x16xbf16> to vector<1x16x16xbf16>
    tpu.vector_store %arg4[%c1, %c0_8, %c0_9], %15 {strides = array<i32>} : memref<6x16x16xbf16, #tpu.memory_space<vmem>>, vector<1x16x16xbf16>,
    %16 = vector.extract_strided_slice %5 {offsets = [0, 32], sizes = [16, 16], strides = [1, 1]} : vector<16x96xf32> to vector<16x16xf32>
    %17 = arith.truncf %16 : vector<16x16xf32> to vector<16x16xbf16>
    %c2 = arith.constant 2 : index
    %c0_10 = arith.constant 0 : index
    %c0_11 = arith.constant 0 : index
    %18 = vector.load %arg4[%c2, %c0_10, %c0_11] : memref<6x16x16xbf16, #tpu.memory_space<vmem>>, vector<1x16x16xbf16>
    %19 = vector.shape_cast %18 : vector<1x16x16xbf16> to vector<16x16xbf16>
    %20 = vector.shape_cast %17 : vector<16x16xbf16> to vector<1x16x16xbf16>
    tpu.vector_store %arg4[%c2, %c0_10, %c0_11], %20 {strides = array<i32>} : memref<6x16x16xbf16, #tpu.memory_space<vmem>>, vector<1x16x16xbf16>,
    %21 = vector.extract_strided_slice %5 {offsets = [0, 48], sizes = [16, 16], strides = [1, 1]} : vector<16x96xf32> to vector<16x16xf32>
    %22 = arith.truncf %21 : vector<16x16xf32> to vector<16x16xbf16>
    %c3 = arith.constant 3 : index
    %c0_12 = arith.constant 0 : index
    %c0_13 = arith.constant 0 : index
    %23 = vector.load %arg4[%c3, %c0_12, %c0_13] : memref<6x16x16xbf16, #tpu.memory_space<vmem>>, vector<1x16x16xbf16>
    %24 = vector.shape_cast %23 : vector<1x16x16xbf16> to vector<16x16xbf16>
    %25 = vector.shape_cast %22 : vector<16x16xbf16> to vector<1x16x16xbf16>
    tpu.vector_store %arg4[%c3, %c0_12, %c0_13], %25 {strides = array<i32>} : memref<6x16x16xbf16, #tpu.memory_space<vmem>>, vector<1x16x16xbf16>,
    %26 = vector.extract_strided_slice %5 {offsets = [0, 64], sizes = [16, 16], strides = [1, 1]} : vector<16x96xf32> to vector<16x16xf32>
    %27 = arith.truncf %26 : vector<16x16xf32> to vector<16x16xbf16>
    %c4 = arith.constant 4 : index
    %c0_14 = arith.constant 0 : index
    %c0_15 = arith.constant 0 : index
    %28 = vector.load %arg4[%c4, %c0_14, %c0_15] : memref<6x16x16xbf16, #tpu.memory_space<vmem>>, vector<1x16x16xbf16>
    %29 = vector.shape_cast %28 : vector<1x16x16xbf16> to vector<16x16xbf16>
    %30 = vector.shape_cast %27 : vector<16x16xbf16> to vector<1x16x16xbf16>
    tpu.vector_store %arg4[%c4, %c0_14, %c0_15], %30 {strides = array<i32>} : memref<6x16x16xbf16, #tpu.memory_space<vmem>>, vector<1x16x16xbf16>,
    %31 = vector.extract_strided_slice %5 {offsets = [0, 80], sizes = [16, 16], strides = [1, 1]} : vector<16x96xf32> to vector<16x16xf32>
    %32 = arith.truncf %31 : vector<16x16xf32> to vector<16x16xbf16>
    %c5 = arith.constant 5 : index
    %c0_16 = arith.constant 0 : index
    %c0_17 = arith.constant 0 : index
    %33 = vector.load %arg4[%c5, %c0_16, %c0_17] : memref<6x16x16xbf16, #tpu.memory_space<vmem>>, vector<1x16x16xbf16>
    %34 = vector.shape_cast %33 : vector<1x16x16xbf16> to vector<16x16xbf16>
    %35 = vector.shape_cast %32 : vector<16x16xbf16> to vector<1x16x16xbf16>
    tpu.vector_store %arg4[%c5, %c0_16, %c0_17], %35 {strides = array<i32>} : memref<6x16x16xbf16, #tpu.memory_space<vmem>>, vector<1x16x16xbf16>,
    return
  }
  func.func @transform_0(%arg0: i32) -> (i32, i32) {
    %c0_i32 = arith.constant 0 : i32
    %c0_i32_0 = arith.constant 0 : i32
    return %arg0, %c0_i32 : i32, i32
  }
  func.func @transform_1(%arg0: i32) -> (i32, i32) {
    %c0_i32 = arith.constant 0 : i32
    %c0_i32_0 = arith.constant 0 : i32
    %c0_i32_1 = arith.constant 0 : i32
    return %c0_i32, %c0_i32_0 : i32, i32
  }
  func.func @transform_2(%arg0: i32) -> (i32, i32) {
    %c0_i32 = arith.constant 0 : i32
    %c0_i32_0 = arith.constant 0 : i32
    %c0_i32_1 = arith.constant 0 : i32
    return %c0_i32, %c0_i32_0 : i32, i32
  }
  func.func @transform_3(%arg0: i32) -> (i32, i32, i32) {
    %c0_i32 = arith.constant 0 : i32
    %c0_i32_0 = arith.constant 0 : i32
    %c0_i32_1 = arith.constant 0 : i32
    return %c0_i32, %arg0, %c0_i32_0 : i32, i32, i32
  }
}

module attributes {stable_mosaic.version = 11 : i64} {
  func.func @_attention_kernel(%arg0: i32, %arg1: i32, %arg2: memref<1x1x8xf32, #tpu.memory_space<vmem>>, %arg3: memref<1x8x16xbf16, #tpu.memory_space<vmem>>, %arg4: memref<1x8x16xbf16, #tpu.memory_space<vmem>>, %arg5: memref<1x8x16xbf16, #tpu.memory_space<vmem>>, %arg6: memref<1x8x16xbf16, #tpu.memory_space<vmem>>) attributes {dimension_semantics = [#tpu.dimension_semantics<parallel>, #tpu.dimension_semantics<parallel>], iteration_bounds = array<i64: 2, 2>, scalar_prefetch = 0 : i64, scratch_operands = 0 : i64, tpu.core_type = #tpu.core_type<tc>, window_params = [{transform_indices = @transform_0, window_bounds = array<i64: 1, 1, 8>}, {transform_indices = @transform_1, window_bounds = array<i64: 1, 8, 16>}, {transform_indices = @transform_2, window_bounds = array<i64: 1, 8, 16>}, {transform_indices = @transform_3, window_bounds = array<i64: 1, 8, 16>}, {transform_indices = @transform_4, window_bounds = array<i64: 1, 8, 16>}]} {
    %c0 = arith.constant 0 : index
    %c0_0 = arith.constant 0 : index
    %c0_1 = arith.constant 0 : index
    %0 = vector.load %arg3[%c0, %c0_0, %c0_1] : memref<1x8x16xbf16, #tpu.memory_space<vmem>>, vector<1x8x16xbf16>
    %1 = vector.shape_cast %0 : vector<1x8x16xbf16> to vector<8x16xbf16>
    %c0_2 = arith.constant 0 : index
    %c0_3 = arith.constant 0 : index
    %c0_4 = arith.constant 0 : index
    %2 = vector.load %arg4[%c0_2, %c0_3, %c0_4] : memref<1x8x16xbf16, #tpu.memory_space<vmem>>, vector<1x8x16xbf16>
    %3 = vector.shape_cast %2 : vector<1x8x16xbf16> to vector<8x16xbf16>
    %c0_5 = arith.constant 0 : index
    %c0_6 = arith.constant 0 : index
    %c0_7 = arith.constant 0 : index
    %4 = vector.load %arg5[%c0_5, %c0_6, %c0_7] : memref<1x8x16xbf16, #tpu.memory_space<vmem>>, vector<1x8x16xbf16>
    %5 = vector.shape_cast %4 : vector<1x8x16xbf16> to vector<8x16xbf16>
    %cst = arith.constant dense<0.000000e+00> : vector<8x8xf32>
    %6 = tpu.matmul %1, %3, %cst {dimension_numbers = #tpu.dot_dimension_numbers<[1], [1], [0], [0], [0, 0, 1, 0], [], []>} : vector<8x16xbf16>, vector<8x16xbf16>, vector<8x8xf32> -> vector<8x8xf32>
    %cst_8 = arith.constant 2.500000e-01 : f32
    %7 = vector.broadcast %cst_8 : f32 to vector<8x8xf32>
    %8 = arith.mulf %6, %7 : vector<8x8xf32>
    %c0_9 = arith.constant 0 : index
    %c0_10 = arith.constant 0 : index
    %c0_11 = arith.constant 0 : index
    %9 = vector.load %arg2[%c0_9, %c0_10, %c0_11] : memref<1x1x8xf32, #tpu.memory_space<vmem>>, vector<1x1x8xf32>
    %10 = vector.shape_cast %9 : vector<1x1x8xf32> to vector<1x8xf32>
    %11 = vector.broadcast %10 : vector<1x8xf32> to vector<8x8xf32>
    %12 = arith.addf %8, %11 : vector<8x8xf32>
    %cst_12 = arith.constant dense<0xFF800000> : vector<8xf32>
    %13 = vector.multi_reduction <maximumf>, %12, %cst_12 [1] : vector<8x8xf32> to vector<8xf32>
    %14 = vector.shape_cast %13 : vector<8xf32> to vector<8x1xf32>
    %15 = vector.broadcast %14 : vector<8x1xf32> to vector<8x8xf32>
    %16 = arith.subf %12, %15 : vector<8x8xf32>
    %17 = math.exp %16 : vector<8x8xf32>
    %cst_13 = arith.constant dense<0.000000e+00> : vector<8xf32>
    %18 = vector.multi_reduction <add>, %17, %cst_13 [1] : vector<8x8xf32> to vector<8xf32>
    %19 = vector.shape_cast %18 : vector<8xf32> to vector<8x1xf32>
    %20 = tpu.reciprocal %19 {approx = true} : vector<8x1xf32> -> vector<8x1xf32>
    %21 = vector.broadcast %20 : vector<8x1xf32> to vector<8x8xf32>
    %22 = arith.mulf %17, %21 : vector<8x8xf32>
    %23 = arith.truncf %22 : vector<8x8xf32> to vector<8x8xbf16>
    %cst_14 = arith.constant dense<0.000000e+00> : vector<8x16xf32>
    %24 = tpu.matmul %23, %5, %cst_14 {dimension_numbers = #tpu.dot_dimension_numbers<[1], [0], [0], [1], [0, 0, 1, 1], [], []>} : vector<8x8xbf16>, vector<8x16xbf16>, vector<8x16xf32> -> vector<8x16xf32>
    %25 = arith.truncf %24 : vector<8x16xf32> to vector<8x16xbf16>
    %c0_15 = arith.constant 0 : index
    %c0_16 = arith.constant 0 : index
    %c0_17 = arith.constant 0 : index
    %26 = vector.load %arg6[%c0_15, %c0_16, %c0_17] : memref<1x8x16xbf16, #tpu.memory_space<vmem>>, vector<1x8x16xbf16>
    %27 = vector.shape_cast %26 : vector<1x8x16xbf16> to vector<8x16xbf16>
    %28 = vector.shape_cast %25 : vector<8x16xbf16> to vector<1x8x16xbf16>
    tpu.vector_store %arg6[%c0_15, %c0_16, %c0_17], %28 {strides = array<i32>} : memref<1x8x16xbf16, #tpu.memory_space<vmem>>, vector<1x8x16xbf16>,
    return
  }
  func.func @transform_0(%arg0: i32, %arg1: i32) -> (i32, i32, i32) {
    %c0_i32 = arith.constant 0 : i32
    %c0_i32_0 = arith.constant 0 : i32
    %c0_i32_1 = arith.constant 0 : i32
    return %arg0, %c0_i32, %c0_i32_0 : i32, i32, i32
  }
  func.func @transform_1(%arg0: i32, %arg1: i32) -> (i32, i32, i32) {
    %c0_i32 = arith.constant 0 : i32
    %c0_i32_0 = arith.constant 0 : i32
    return %arg1, %arg0, %c0_i32 : i32, i32, i32
  }
  func.func @transform_2(%arg0: i32, %arg1: i32) -> (i32, i32, i32) {
    %c2_i32 = arith.constant 2 : i32
    %0 = arith.addi %c2_i32, %arg1 : i32
    %c0_i32 = arith.constant 0 : i32
    %c0_i32_0 = arith.constant 0 : i32
    return %0, %arg0, %c0_i32 : i32, i32, i32
  }
  func.func @transform_3(%arg0: i32, %arg1: i32) -> (i32, i32, i32) {
    %c4_i32 = arith.constant 4 : i32
    %0 = arith.addi %c4_i32, %arg1 : i32
    %c0_i32 = arith.constant 0 : i32
    %c0_i32_0 = arith.constant 0 : i32
    return %0, %arg0, %c0_i32 : i32, i32, i32
  }
  func.func @transform_4(%arg0: i32, %arg1: i32) -> (i32, i32, i32) {
    %c0_i32 = arith.constant 0 : i32
    %c0_i32_0 = arith.constant 0 : i32
    return %arg1, %arg0, %c0_i32 : i32, i32, i32
  }
}

module attributes {stable_mosaic.version = 11 : i64} {
  func.func @_dense_ln_kernel(%arg0: i32, %arg1: memref<2x16x16xbf16, #tpu.memory_space<vmem>>, %arg2: memref<2x16x32xbf16, #tpu.memory_space<vmem>>, %arg3: memref<1x32xf32, #tpu.memory_space<vmem>>, %arg4: memref<16x32xbf16, #tpu.memory_space<vmem>>, %arg5: memref<1x32xf32, #tpu.memory_space<vmem>>, %arg6: memref<1x32xf32, #tpu.memory_space<vmem>>, %arg7: memref<16x32xbf16, #tpu.memory_space<vmem>>) attributes {dimension_semantics = [#tpu.dimension_semantics<parallel>], iteration_bounds = array<i64: 1>, scalar_prefetch = 0 : i64, scratch_operands = 0 : i64, tpu.core_type = #tpu.core_type<tc>, window_params = [{transform_indices = @transform_0, window_bounds = array<i64: 2, 16, 16>}, {pipeline_mode = #tpu.pipeline_mode<synchronous>, transform_indices = @transform_1, window_bounds = array<i64: 2, 16, 32>}, {pipeline_mode = #tpu.pipeline_mode<synchronous>, transform_indices = @transform_2, window_bounds = array<i64: 1, 32>}, {transform_indices = @transform_3, window_bounds = array<i64: 16, 32>}, {pipeline_mode = #tpu.pipeline_mode<synchronous>, transform_indices = @transform_4, window_bounds = array<i64: 1, 32>}, {pipeline_mode = #tpu.pipeline_mode<synchronous>, transform_indices = @transform_5, window_bounds = array<i64: 1, 32>}, {transform_indices = @transform_6, window_bounds = array<i64: 16, 32>}]} {
    %c0 = arith.constant 0 : index
    %c0_0 = arith.constant 0 : index
    %0 = vector.load %arg3[%c0, %c0_0] : memref<1x32xf32, #tpu.memory_space<vmem>>, vector<1x32xf32>
    %c0_1 = arith.constant 0 : index
    %c0_2 = arith.constant 0 : index
    %1 = vector.load %arg4[%c0_1, %c0_2] : memref<16x32xbf16, #tpu.memory_space<vmem>>, vector<16x32xbf16>
    %2 = arith.extf %1 : vector<16x32xbf16> to vector<16x32xf32>
    %3 = vector.broadcast %0 : vector<1x32xf32> to vector<16x32xf32>
    %4 = arith.addf %3, %2 : vector<16x32xf32>
    %c0_3 = arith.constant 0 : index
    %c0_4 = arith.constant 0 : index
    %c0_5 = arith.constant 0 : index
    %5 = vector.load %arg1[%c0_3, %c0_4, %c0_5] : memref<2x16x16xbf16, #tpu.memory_space<vmem>>, vector<1x16x16xbf16>
    %6 = vector.shape_cast %5 : vector<1x16x16xbf16> to vector<16x16xbf16>
    %c0_6 = arith.constant 0 : index
    %c0_7 = arith.constant 0 : index
    %c0_8 = arith.constant 0 : index
    %7 = vector.load %arg2[%c0_6, %c0_7, %c0_8] : memref<2x16x32xbf16, #tpu.memory_space<vmem>>, vector<1x16x32xbf16>
    %8 = vector.shape_cast %7 : vector<1x16x32xbf16> to vector<16x32xbf16>
    %cst = arith.constant dense<0.000000e+00> : vector<16x32xf32>
    %9 = tpu.matmul %6, %8, %cst {dimension_numbers = #tpu.dot_dimension_numbers<[1], [0], [0], [1], [0, 0, 1, 1], [], []>} : vector<16x16xbf16>, vector<16x32xbf16>, vector<16x32xf32> -> vector<16x32xf32>
    %10 = arith.addf %4, %9 : vector<16x32xf32>
    %c1 = arith.constant 1 : index
    %c0_9 = arith.constant 0 : index
    %c0_10 = arith.constant 0 : index
    %11 = vector.load %arg1[%c1, %c0_9, %c0_10] : memref<2x16x16xbf16, #tpu.memory_space<vmem>>, vector<1x16x16xbf16>
    %12 = vector.shape_cast %11 : vector<1x16x16xbf16> to vector<16x16xbf16>
    %c1_11 = arith.constant 1 : index
    %c0_12 = arith.constant 0 : index
    %c0_13 = arith.constant 0 : index
    %13 = vector.load %arg2[%c1_11, %c0_12, %c0_13] : memref<2x16x32xbf16, #tpu.memory_space<vmem>>, vector<1x16x32xbf16>
    %14 = vector.shape_cast %13 : vector<1x16x32xbf16> to vector<16x32xbf16>
    %cst_14 = arith.constant dense<0.000000e+00> : vector<16x32xf32>
    %15 = tpu.matmul %12, %14, %cst_14 {dimension_numbers = #tpu.dot_dimension_numbers<[1], [0], [0], [1], [0, 0, 1, 1], [], []>} : vector<16x16xbf16>, vector<16x32xbf16>, vector<16x32xf32> -> vector<16x32xf32>
    %16 = arith.addf %10, %15 : vector<16x32xf32>
    %cst_15 = arith.constant dense<0.000000e+00> : vector<16xf32>
    %17 = vector.multi_reduction <add>, %16, %cst_15 [1] : vector<16x32xf32> to vector<16xf32>
    %18 = vector.shape_cast %17 : vector<16xf32> to vector<16x1xf32>
    %cst_16 = arith.constant 3.200000e+01 : f32
    %19 = vector.broadcast %cst_16 : f32 to vector<16x1xf32>
    %20 = arith.divf %18, %19 : vector<16x1xf32>
    %21 = vector.broadcast %20 : vector<16x1xf32> to vector<16x32xf32>
    %22 = arith.subf %16, %21 : vector<16x32xf32>
    %23 = arith.mulf %22, %22 : vector<16x32xf32>
    %cst_17 = arith.constant dense<0.000000e+00> : vector<16xf32>
    %24 = vector.multi_reduction <add>, %23, %cst_17 [1] : vector<16x32xf32> to vector<16xf32>
    %25 = vector.shape_cast %24 : vector<16xf32> to vector<16x1xf32>
    %cst_18 = arith.constant 3.200000e+01 : f32
    %26 = vector.broadcast %cst_18 : f32 to vector<16x1xf32>
    %27 = arith.divf %25, %26 : vector<16x1xf32>
    %cst_19 = arith.constant 9.99999996E-13 : f32
    %28 = vector.broadcast %cst_19 : f32 to vector<16x1xf32>
    %29 = arith.addf %27, %28 : vector<16x1xf32>
    %30 = math.rsqrt %29 : vector<16x1xf32>
    %31 = vector.broadcast %30 : vector<16x1xf32> to vector<16x32xf32>
    %32 = arith.mulf %22, %31 : vector<16x32xf32>
    %c0_20 = arith.constant 0 : index
    %c0_21 = arith.constant 0 : index
    %33 = vector.load %arg5[%c0_20, %c0_21] : memref<1x32xf32, #tpu.memory_space<vmem>>, vector<1x32xf32>
    %34 = vector.broadcast %33 : vector<1x32xf32> to vector<16x32xf32>
    %35 = arith.mulf %32, %34 : vector<16x32xf32>
    %c0_22 = arith.constant 0 : index
    %c0_23 = arith.constant 0 : index
    %36 = vector.load %arg6[%c0_22, %c0_23] : memref<1x32xf32, #tpu.memory_space<vmem>>, vector<1x32xf32>
    %37 = vector.broadcast %36 : vector<1x32xf32> to vector<16x32xf32>
    %38 = arith.addf %35, %37 : vector<16x32xf32>
    %39 = arith.truncf %38 : vector<16x32xf32> to vector<16x32xbf16>
    %c0_24 = arith.constant 0 : index
    %c0_25 = arith.constant 0 : index
    %40 = vector.load %arg7[%c0_24, %c0_25] : memref<16x32xbf16, #tpu.memory_space<vmem>>, vector<16x32xbf16>
    tpu.vector_store %arg7[%c0_24, %c0_25], %39 {strides = array<i32>} : memref<16x32xbf16, #tpu.memory_space<vmem>>, vector<16x32xbf16>,
    return
  }
  func.func @transform_0(%arg0: i32) -> (i32, i32, i32) {
    %c0_i32 = arith.constant 0 : i32
    %c0_i32_0 = arith.constant 0 : i32
    %c0_i32_1 = arith.constant 0 : i32
    return %c0_i32, %arg0, %c0_i32_0 : i32, i32, i32
  }
  func.func @transform_1(%arg0: i32) -> (i32, i32, i32) {
    %c0_i32 = arith.constant 0 : i32
    %c0_i32_0 = arith.constant 0 : i32
    %c0_i32_1 = arith.constant 0 : i32
    %c0_i32_2 = arith.constant 0 : i32
    return %c0_i32, %c0_i32_0, %c0_i32_1 : i32, i32, i32
  }
  func.func @transform_2(%arg0: i32) -> (i32, i32) {
    %c0_i32 = arith.constant 0 : i32
    %c0_i32_0 = arith.constant 0 : i32
    %c0_i32_1 = arith.constant 0 : i32
    return %c0_i32, %c0_i32_0 : i32, i32
  }
  func.func @transform_3(%arg0: i32) -> (i32, i32) {
    %c0_i32 = arith.constant 0 : i32
    %c0_i32_0 = arith.constant 0 : i32
    return %arg0, %c0_i32 : i32, i32
  }
  func.func @transform_4(%arg0: i32) -> (i32, i32) {
    %c0_i32 = arith.constant 0 : i32
    %c0_i32_0 = arith.constant 0 : i32
    %c0_i32_1 = arith.constant 0 : i32
    return %c0_i32, %c0_i32_0 : i32, i32
  }
  func.func @transform_5(%arg0: i32) -> (i32, i32) {
    %c0_i32 = arith.constant 0 : i32
    %c0_i32_0 = arith.constant 0 : i32
    %c0_i32_1 = arith.constant 0 : i32
    return %c0_i32, %c0_i32_0 : i32, i32
  }
  func.func @transform_6(%arg0: i32) -> (i32, i32) {
    %c0_i32 = arith.constant 0 : i32
    %c0_i32_0 = arith.constant 0 : i32
    return %arg0, %c0_i32 : i32, i32
  }
}

module attributes {stable_mosaic.version = 11 : i64} {
  func.func @_dense_kernel(%arg0: i32, %arg1: memref<16x32xbf16, #tpu.memory_space<vmem>>, %arg2: memref<32x64xbf16, #tpu.memory_space<vmem>>, %arg3: memref<1x64xf32, #tpu.memory_space<vmem>>, %arg4: memref<16x64xbf16, #tpu.memory_space<vmem>>) attributes {dimension_semantics = [#tpu.dimension_semantics<parallel>], iteration_bounds = array<i64: 1>, scalar_prefetch = 0 : i64, scratch_operands = 0 : i64, tpu.core_type = #tpu.core_type<tc>, window_params = [{transform_indices = @transform_0, window_bounds = array<i64: 16, 32>}, {pipeline_mode = #tpu.pipeline_mode<synchronous>, transform_indices = @transform_1, window_bounds = array<i64: 32, 64>}, {pipeline_mode = #tpu.pipeline_mode<synchronous>, transform_indices = @transform_2, window_bounds = array<i64: 1, 64>}, {transform_indices = @transform_3, window_bounds = array<i64: 16, 64>}]} {
    %c0 = arith.constant 0 : index
    %c0_0 = arith.constant 0 : index
    %0 = vector.load %arg1[%c0, %c0_0] : memref<16x32xbf16, #tpu.memory_space<vmem>>, vector<16x32xbf16>
    %c0_1 = arith.constant 0 : index
    %c0_2 = arith.constant 0 : index
    %1 = vector.load %arg2[%c0_1, %c0_2] : memref<32x64xbf16, #tpu.memory_space<vmem>>, vector<32x64xbf16>
    %cst = arith.constant dense<0.000000e+00> : vector<16x64xf32>
    %2 = tpu.matmul %0, %1, %cst {dimension_numbers = #tpu.dot_dimension_numbers<[1], [0], [0], [1], [0, 0, 1, 1], [], []>} : vector<16x32xbf16>, vector<32x64xbf16>, vector<16x64xf32> -> vector<16x64xf32>
    %c0_3 = arith.constant 0 : index
    %c0_4 = arith.constant 0 : index
    %3 = vector.load %arg3[%c0_3, %c0_4] : memref<1x64xf32, #tpu.memory_space<vmem>>, vector<1x64xf32>
    %4 = vector.broadcast %3 : vector<1x64xf32> to vector<16x64xf32>
    %5 = arith.addf %2, %4 : vector<16x64xf32>
    %cst_5 = arith.constant 5.000000e-01 : f32
    %6 = vector.broadcast %cst_5 : f32 to vector<16x64xf32>
    %7 = arith.mulf %6, %5 : vector<16x64xf32>
    %cst_6 = arith.constant 0.707106769 : f32
    %8 = vector.broadcast %cst_6 : f32 to vector<16x64xf32>
    %9 = arith.mulf %5, %8 : vector<16x64xf32>
    %10 = math.erf %9 : vector<16x64xf32>
    %cst_7 = arith.constant 1.000000e+00 : f32
    %11 = vector.broadcast %cst_7 : f32 to vector<16x64xf32>
    %12 = arith.addf %11, %10 : vector<16x64xf32>
    %13 = arith.mulf %7, %12 : vector<16x64xf32>
    %14 = arith.truncf %13 : vector<16x64xf32> to vector<16x64xbf16>
    %c0_8 = arith.constant 0 : index
    %c0_9 = arith.constant 0 : index
    %15 = vector.load %arg4[%c0_8, %c0_9] : memref<16x64xbf16, #tpu.memory_space<vmem>>, vector<16x64xbf16>
    tpu.vector_store %arg4[%c0_8, %c0_9], %14 {strides = array<i32>} : memref<16x64xbf16, #tpu.memory_space<vmem>>, vector<16x64xbf16>,
    return
  }
  func.func @transform_0(%arg0: i32) -> (i32, i32) {
    %c0_i32 = arith.constant 0 : i32
    %c0_i32_0 = arith.constant 0 : i32
    return %arg0, %c0_i32 : i32, i32
  }
  func.func @transform_1(%arg0: i32) -> (i32, i32) {
    %c0_i32 = arith.constant 0 : i32
    %c0_i32_0 = arith.constant 0 : i32
    %c0_i32_1 = arith.constant 0 : i32
    return %c0_i32, %c0_i32_0 : i32, i32
  }
  func.func @transform_2(%arg0: i32) -> (i32, i32) {
    %c0_i32 = arith.constant 0 : i32
    %c0_i32_0 = arith.constant 0 : i32
    %c0_i32_1 = arith.constant 0 : i32
    return %c0_i32, %c0_i32_0 : i32, i32
  }
  func.func @transform_3(%arg0: i32) -> (i32, i32) {
    %c0_i32 = arith.constant 0 : i32
    %c0_i32_0 = arith.constant 0 : i32
    return %arg0, %c0_i32 : i32, i32
  }
}

module attributes {stable_mosaic.version = 11 : i64} {
  func.func @_dense_ln_kernel(%arg0: i32, %arg1: memref<1x16x64xbf16, #tpu.memory_space<vmem>>, %arg2: memref<1x64x32xbf16, #tpu.memory_space<vmem>>, %arg3: memref<1x32xf32, #tpu.memory_space<vmem>>, %arg4: memref<16x32xbf16, #tpu.memory_space<vmem>>, %arg5: memref<1x32xf32, #tpu.memory_space<vmem>>, %arg6: memref<1x32xf32, #tpu.memory_space<vmem>>, %arg7: memref<16x32xbf16, #tpu.memory_space<vmem>>) attributes {dimension_semantics = [#tpu.dimension_semantics<parallel>], iteration_bounds = array<i64: 1>, scalar_prefetch = 0 : i64, scratch_operands = 0 : i64, tpu.core_type = #tpu.core_type<tc>, window_params = [{transform_indices = @transform_0, window_bounds = array<i64: 1, 16, 64>}, {pipeline_mode = #tpu.pipeline_mode<synchronous>, transform_indices = @transform_1, window_bounds = array<i64: 1, 64, 32>}, {pipeline_mode = #tpu.pipeline_mode<synchronous>, transform_indices = @transform_2, window_bounds = array<i64: 1, 32>}, {transform_indices = @transform_3, window_bounds = array<i64: 16, 32>}, {pipeline_mode = #tpu.pipeline_mode<synchronous>, transform_indices = @transform_4, window_bounds = array<i64: 1, 32>}, {pipeline_mode = #tpu.pipeline_mode<synchronous>, transform_indices = @transform_5, window_bounds = array<i64: 1, 32>}, {transform_indices = @transform_6, window_bounds = array<i64: 16, 32>}]} {
    %c0 = arith.constant 0 : index
    %c0_0 = arith.constant 0 : index
    %0 = vector.load %arg3[%c0, %c0_0] : memref<1x32xf32, #tpu.memory_space<vmem>>, vector<1x32xf32>
    %c0_1 = arith.constant 0 : index
    %c0_2 = arith.constant 0 : index
    %1 = vector.load %arg4[%c0_1, %c0_2] : memref<16x32xbf16, #tpu.memory_space<vmem>>, vector<16x32xbf16>
    %2 = arith.extf %1 : vector<16x32xbf16> to vector<16x32xf32>
    %3 = vector.broadcast %0 : vector<1x32xf32> to vector<16x32xf32>
    %4 = arith.addf %3, %2 : vector<16x32xf32>
    %c0_3 = arith.constant 0 : index
    %c0_4 = arith.constant 0 : index
    %c0_5 = arith.constant 0 : index
    %5 = vector.load %arg1[%c0_3, %c0_4, %c0_5] : memref<1x16x64xbf16, #tpu.memory_space<vmem>>, vector<1x16x64xbf16>
    %6 = vector.shape_cast %5 : vector<1x16x64xbf16> to vector<16x64xbf16>
    %c0_6 = arith.constant 0 : index
    %c0_7 = arith.constant 0 : index
    %c0_8 = arith.constant 0 : index
    %7 = vector.load %arg2[%c0_6, %c0_7, %c0_8] : memref<1x64x32xbf16, #tpu.memory_space<vmem>>, vector<1x64x32xbf16>
    %8 = vector.shape_cast %7 : vector<1x64x32xbf16> to vector<64x32xbf16>
    %cst = arith.constant dense<0.000000e+00> : vector<16x32xf32>
    %9 = tpu.matmul %6, %8, %cst {dimension_numbers = #tpu.dot_dimension_numbers<[1], [0], [0], [1], [0, 0, 1, 1], [], []>} : vector<16x64xbf16>, vector<64x32xbf16>, vector<16x32xf32> -> vector<16x32xf32>
    %10 = arith.addf %4, %9 : vector<16x32xf32>
    %cst_9 = arith.constant dense<0.000000e+00> : vector<16xf32>
    %11 = vector.multi_reduction <add>, %10, %cst_9 [1] : vector<16x32xf32> to vector<16xf32>
    %12 = vector.shape_cast %11 : vector<16xf32> to vector<16x1xf32>
    %cst_10 = arith.constant 3.200000e+01 : f32
    %13 = vector.broadcast %cst_10 : f32 to vector<16x1xf32>
    %14 = arith.divf %12, %13 : vector<16x1xf32>
    %15 = vector.broadcast %14 : vector<16x1xf32> to vector<16x32xf32>
    %16 = arith.subf %10, %15 : vector<16x32xf32>
    %17 = arith.mulf %16, %16 : vector<16x32xf32>
    %cst_11 = arith.constant dense<0.000000e+00> : vector<16xf32>
    %18 = vector.multi_reduction <add>, %17, %cst_11 [1] : vector<16x32xf32> to vector<16xf32>
    %19 = vector.shape_cast %18 : vector<16xf32> to vector<16x1xf32>
    %cst_12 = arith.constant 3.200000e+01 : f32
    %20 = vector.broadcast %cst_12 : f32 to vector<16x1xf32>
    %21 = arith.divf %19, %20 : vector<16x1xf32>
    %cst_13 = arith.constant 9.99999996E-13 : f32
    %22 = vector.broadcast %cst_13 : f32 to vector<16x1xf32>
    %23 = arith.addf %21, %22 : vector<16x1xf32>
    %24 = math.rsqrt %23 : vector<16x1xf32>
    %25 = vector.broadcast %24 : vector<16x1xf32> to vector<16x32xf32>
    %26 = arith.mulf %16, %25 : vector<16x32xf32>
    %c0_14 = arith.constant 0 : index
    %c0_15 = arith.constant 0 : index
    %27 = vector.load %arg5[%c0_14, %c0_15] : memref<1x32xf32, #tpu.memory_space<vmem>>, vector<1x32xf32>
    %28 = vector.broadcast %27 : vector<1x32xf32> to vector<16x32xf32>
    %29 = arith.mulf %26, %28 : vector<16x32xf32>
    %c0_16 = arith.constant 0 : index
    %c0_17 = arith.constant 0 : index
    %30 = vector.load %arg6[%c0_16, %c0_17] : memref<1x32xf32, #tpu.memory_space<vmem>>, vector<1x32xf32>
    %31 = vector.broadcast %30 : vector<1x32xf32> to vector<16x32xf32>
    %32 = arith.addf %29, %31 : vector<16x32xf32>
    %33 = arith.truncf %32 : vector<16x32xf32> to vector<16x32xbf16>
    %c0_18 = arith.constant 0 : index
    %c0_19 = arith.constant 0 : index
    %34 = vector.load %arg7[%c0_18, %c0_19] : memref<16x32xbf16, #tpu.memory_space<vmem>>, vector<16x32xbf16>
    tpu.vector_store %arg7[%c0_18, %c0_19], %33 {strides = array<i32>} : memref<16x32xbf16, #tpu.memory_space<vmem>>, vector<16x32xbf16>,
    return
  }
  func.func @transform_0(%arg0: i32) -> (i32, i32, i32) {
    %c0_i32 = arith.constant 0 : i32
    %c0_i32_0 = arith.constant 0 : i32
    %c0_i32_1 = arith.constant 0 : i32
    return %c0_i32, %arg0, %c0_i32_0 : i32, i32, i32
  }
  func.func @transform_1(%arg0: i32) -> (i32, i32, i32) {
    %c0_i32 = arith.constant 0 : i32
    %c0_i32_0 = arith.constant 0 : i32
    %c0_i32_1 = arith.constant 0 : i32
    %c0_i32_2 = arith.constant 0 : i32
    return %c0_i32, %c0_i32_0, %c0_i32_1 : i32, i32, i32
  }
  func.func @transform_2(%arg0: i32) -> (i32, i32) {
    %c0_i32 = arith.constant 0 : i32
    %c0_i32_0 = arith.constant 0 : i32
    %c0_i32_1 = arith.constant 0 : i32
    return %c0_i32, %c0_i32_0 : i32, i32
  }
  func.func @transform_3(%arg0: i32) -> (i32, i32) {
    %c0_i32 = arith.constant 0 : i32
    %c0_i32_0 = arith.constant 0 : i32
    return %arg0, %c0_i32 : i32, i32
  }
  func.func @transform_4(%arg0: i32) -> (i32, i32) {
    %c0_i32 = arith.constant 0 : i32
    %c0_i32_0 = arith.constant 0 : i32
    %c0_i32_1 = arith.constant 0 : i32
    return %c0_i32, %c0_i32_0 : i32, i32
  }
  func.func @transform_5(%arg0: i32) -> (i32, i32) {
    %c0_i32 = arith.constant 0 : i32
    %c0_i32_0 = arith.constant 0 : i32
    %c0_i32_1 = arith.constant 0 : i32
    return %c0_i32, %c0_i32_0 : i32, i32
  }
  func.func @transform_6(%arg0: i32) -> (i32, i32) {
    %c0_i32 = arith.constant 0 : i32
    %c0_i32_0 = arith.constant 0 : i32
    return %arg0, %c0_i32 : i32, i32
  }
}

</mosaic_0001>

<bundles_post_ra>
// kernel: text_classifier_forward.12
= control target key start
LH: loop header
LB: loop body
LE: loop exit
PB: predicated region body
PF: predicated region fallthrough
CT: control target
= control target key end

     0   :  { %v190_v0 = vmov 0.0   ;;  %vm191_vm0 = vmmov 0   ;;  %vm45_vm1 = vcmask 261120   ;;  %vm98_vm2 = vcmask 125952   ;;  %s193_s21 = smov 112   ;;  %s194_s23 = smov 80   ;;  %s277_s1 = inlined_call_operand.vmem [shape: bf16[32,96], index: 1, kind: input, shape index: {}]   ;;  %s278_s0 = inlined_call_operand.vmem [shape: bf16[16,32], index: 0, kind: input, shape index: {}]   ;;  %s279_s2 = inlined_call_operand.vmem [shape: f32[1,96], index: 2, kind: input, shape index: {}]   ;;  %s280_s3 = inlined_call_operand.vmem [shape: bf16[6,16,16], index: 3, kind: output, shape index: {}]  }
   0x1   :  { %172 = vmatprep.subr.bf16.mxu0 %v190_v0  ;;  %v187_v1 = vld [vmem:[%s277_s1] sm:$0xff]   ;;  %176 = vmatprep.mubr.msk.bf16.mxu0 %vm191_vm0, %v190_v0  ;;  %v188_v2 = vld [vmem:[%s277_s1 + $0x8] sm:$0xff]   ;;  %s195_s24 = smov 64   ;;  %s196_s25 = smov 48  }
   0x2   :  { %173 = vmatpush3.bf16.msra.mxu0 %v187_v1  ;;  %v189_v3 = vld [vmem:[%s278_s0] sm:$0xff]   ;;  %s192_s0 = smov 96  }
   0x3   :  { %174 = vmatprep.subr.bf16.mxu0 %v190_v0  ;;  %v150_v4 = vld [vmem:[%s279_s2] ss:$0 sm:$0xff] }
   0x6   :  { %175 = vmatpush3.bf16.msra.mxu0 %v188_v2 }
   0x9   :  { %177 = vmatmul.mubr.msk.bf16.vlgmr.msra.gmra.mrb[0].mxu0 %vm45_vm1, %v189_v3 }
  0xdc   :  { %v83_v5 = vpop.f32.mrb[0].mxu0 }
  0xdd   :  { %v84_v6 = vadd.f32 %v150_v4, %v83_v5  ;;  %v178_v7 = vpop.f32.mrb[1].mxu0 }
  0xde   :  { %v86_v8 = vpop.f32.mrb[2].mxu0 }
  0xdf   :  { %v167_v9 = vpack.c.bf16 %v84_v6, %v84_v6  ;;  %v87_v10 = vadd.f32 %v150_v4, %v86_v8  ;;  %v179_v11 = vpop.f32.mrb[3].mxu0 }
  0xe1   :  { %99 = vst.msk [vmem:[%s280_s3] sm:$0xf] %vm98_vm2, %v167_v9  ;;  %v168_v12 = vpack.c.bf16 %v87_v10, %v87_v10  ;;  %110 = vrot.lane.b32.xlu1 %v167_v9, %s192_s0  ;;  %101 = vrot.lane.b32.xlu0 %v167_v9, %s193_s21 }
  0xe3   :  { %100 = vst.msk [vmem:[%s280_s3 + $0x4] sm:$0xf] %vm98_vm2, %v168_v12 }
  0xe5   :  { %119 = vrot.lane.b32.xlu0 %v167_v9, %s194_s23  ;;  %112 = vrot.lane.b32.xlu1 %v168_v12, %s192_s0 }
  0xe9   :  { %128 = vrot.lane.b32.xlu0 %v167_v9, %s195_s24  ;;  %121 = vrot.lane.b32.xlu1 %v168_v12, %s194_s23 }
  0xed   :  { %130 = vrot.lane.b32.xlu1 %v168_v12, %s195_s24  ;;  %103 = vrot.lane.b32.xlu0 %v168_v12, %s193_s21 }
  0xf1   :  { %139 = vrot.lane.b32.xlu1 %v168_v12, %s196_s25  ;;  %137 = vrot.lane.b32.xlu0 %v167_v9, %s196_s25 }
 0x153   :  { %v111_v13 = vpop.permute.xlu1 %110  ;;  %v102_v14 = vpop.permute.xlu0 %101 }
 0x154   :  { %159 = vst.msk [vmem:[%s280_s3 + $0x10] sm:$0xf] %vm98_vm2, %v111_v13  ;;  %157 = vst.msk [vmem:[%s280_s3 + $0x8] sm:$0xf] %vm98_vm2, %v102_v14 }
 0x157   :  { %v120_v15 = vpop.permute.xlu0 %119  ;;  %v113_v16 = vpop.permute.xlu1 %112 }
 0x158   :  { %161 = vst.msk [vmem:[%s280_s3 + $0x18] sm:$0xf] %vm98_vm2, %v120_v15  ;;  %160 = vst.msk [vmem:[%s280_s3 + $0x14] sm:$0xf] %vm98_vm2, %v113_v16 }
 0x15b   :  { %v129_v17 = vpop.permute.xlu0 %128  ;;  %v122_v18 = vpop.permute.xlu1 %121 }
 0x15c   :  { %163 = vst.msk [vmem:[%s280_s3 + $0x20] sm:$0xf] %vm98_vm2, %v129_v17  ;;  %162 = vst.msk [vmem:[%s280_s3 + $0x1c] sm:$0xf] %vm98_vm2, %v122_v18 }
 0x15f   :  { %v131_v19 = vpop.permute.xlu1 %130  ;;  %v104_v20 = vpop.permute.xlu0 %103 }
 0x160   :  { %164 = vst.msk [vmem:[%s280_s3 + $0x24] sm:$0xf] %vm98_vm2, %v131_v19  ;;  %158 = vst.msk [vmem:[%s280_s3 + $0xc] sm:$0xf] %vm98_vm2, %v104_v20 }
 0x163   :  { %v140_v21 = vpop.permute.xlu1 %139  ;;  %v138_v22 = vpop.permute.xlu0 %137 }
 0x164   :  { %166 = vst.msk [vmem:[%s280_s3 + $0x2c] sm:$0xf] %vm98_vm2, %v140_v21  ;;  %165 = vst.msk [vmem:[%s280_s3 + $0x28] sm:$0xf] %vm98_vm2, %v138_v22 }

// kernel: text_classifier_forward.11
= control target key start
LH: loop header
LB: loop body
LE: loop exit
PB: predicated region body
PF: predicated region fallthrough
CT: control target
= control target key end

     0   :  { %vm23_vm0 = vcmask 261120   ;;  %vm77_vm1 = vcmask 257024   ;;  %s147_s0 = inlined_call_operand.vmem [shape: f32[16,32], index: 0, kind: input, shape index: {}]   ;;  %s148_s1 = inlined_call_operand.vmem [shape: f32[16,32], index: 1, kind: input, shape index: {}]   ;;  %s149_s2 = inlined_call_operand.vmem [shape: f32[1,32], index: 2, kind: input, shape index: {}]   ;;  %s150_s3 = inlined_call_operand.vmem [shape: f32[1,32], index: 3, kind: input, shape index: {}]   ;;  %s151_s4 = inlined_call_operand.vmem [shape: bf16[16,32], index: 4, kind: output, shape index: {}]  }
   0x1   :  { %v17_v0 = vld [vmem:[%s147_s0] sm:$0xff]  ;;  %v18_v2 = vld [vmem:[%s147_s0 + $0x8] sm:$0xff] }
   0x2   :  { %v19_v1 = vld [vmem:[%s148_s1] sm:$0xff]  ;;  %v20_v4 = vld [vmem:[%s148_s1 + $0x8] sm:$0xff] }
   0x3   :  { %v21_v3 = vadd.f32 %v19_v1, %v17_v0  ;;  %v22_v5 = vadd.f32 %v20_v4, %v18_v2  ;;  %v84_v25 = vld [vmem:[%s149_s2] ss:$0 sm:$0xff] }
   0x4   :  { %v85_v27 = vld [vmem:[%s150_s3] ss:$0 sm:$0xff] }
   0x5   :  { %v24_v6 = vsel %vm23_vm0, %v21_v3, 0.0  ;;  %v27_v7 = vsel %vm23_vm0, %v22_v5, 0.0 }
   0x6   :  { %25 = vadd.xlane.f32.xlu0 %v24_v6 }
   0xa   :  { %28 = vadd.xlane.f32.xlu0 %v27_v7 }
  0x93   :  { %v26_v8 = vpop.xlane.xlu0 %25 }
  0x94   :  { %v31_v9 = vmul.f32 0.03125, %v26_v8 }
  0x96   :  { %v33_v10 = vsub.f32 %v21_v3, %v31_v9 }
  0x97   :  { %v29_v11 = vpop.xlane.xlu0 %28 }
  0x98   :  { %v32_v12 = vmul.f32 0.03125, %v29_v11  ;;  %v35_v13 = vmul.f32 %v33_v10, %v33_v10 }
  0x9a   :  { %v34_v14 = vsub.f32 %v22_v5, %v32_v12  ;;  %v37_v15 = vsel %vm23_vm0, %v35_v13, 0.0 }
  0x9b   :  { %38 = vadd.xlane.f32.xlu1 %v37_v15 }
  0x9c   :  { %v36_v16 = vmul.f32 %v34_v14, %v34_v14 }
  0x9e   :  { %v40_v17 = vsel %vm23_vm0, %v36_v16, 0.0 }
  0x9f   :  { %41 = vadd.xlane.f32.xlu1 %v40_v17 }
 0x128   :  { %v39_v18 = vpop.xlane.xlu1 %38 }
 0x129   :  { %v43_v19 = vmul.f32 0.03125, %v39_v18 }
 0x12b   :  { %v45_v20 = vadd.f32 1e-12, %v43_v19 }
 0x12c   :  { %v42_v21 = vpop.xlane.xlu1 %41 }
 0x12d   :  { %90 = vrsqrt.f32 %v45_v20  ;;  %v44_v22 = vmul.f32 0.03125, %v42_v21 }
 0x12f   :  { %v46_v23 = vadd.f32 1e-12, %v44_v22 }
 0x131   :  { %92 = vrsqrt.f32 %v46_v23 }
 0x137   :  { %v91_v24 = vpop.eup %90 }
 0x138   :  { %v49_v26 = vmul.f32 %v91_v24, %v33_v10 }
 0x13a   :  { %v58_v28 = vmul.f32 %v84_v25, %v49_v26 }
 0x13b   :  { %v93_v29 = vpop.eup %92 }
 0x13c   :  { %v67_v30 = vadd.f32 %v85_v27, %v58_v28  ;;  %v50_v31 = vmul.f32 %v93_v29, %v34_v14 }
 0x13e   :  { %v88_v32 = vpack.c.bf16 %v67_v30, %v67_v30  ;;  %v59_v33 = vmul.f32 %v84_v25, %v50_v31 }
 0x140   :  { %78 = vst.msk [vmem:[%s151_s4] sm:$0xf] %vm77_vm1, %v88_v32  ;;  %v68_v34 = vadd.f32 %v85_v27, %v59_v33 }
 0x142   :  { %v89_v35 = vpack.c.bf16 %v68_v34, %v68_v34 }
 0x144   :  { %79 = vst.msk [vmem:[%s151_s4 + $0x4] sm:$0xf] %vm77_vm1, %v89_v35 }

// kernel: text_classifier_forward.13
= control target key start
LH: loop header
LB: loop body
LE: loop exit
PB: predicated region body
PF: predicated region fallthrough
CT: control target
= control target key end

     0   :  { %s720_s15 = smov 0   ;;  %s722_s16 = smov 0   ;;  %s798_s0 = inlined_call_operand.vmem [shape: f32[2,1,8], index: 0, kind: input, shape index: {}]   ;;  %s799_s1 = inlined_call_operand.vmem [shape: bf16[6,16,16], index: 1, kind: input, shape index: {}, may-alias: {1,2,3}]   ;;  %s800_s2 = inlined_call_operand.vmem [shape: bf16[6,16,16], index: 2, kind: input, shape index: {}, may-alias: {1,2,3}]   ;;  %s801_s3 = inlined_call_operand.vmem [shape: bf16[6,16,16], index: 3, kind: input, shape index: {}, may-alias: {1,2,3}]   ;;  %s802_s4 = inlined_call_operand.vmem [shape: bf16[2,16,16], index: 4, kind: output, shape index: {}]  }
   0x1   :  { %s724_s17 = smov 0   ;;  %s726_s18 = smov 0  }
   0x2   :  { %s728_s19 = smov 0  }
   0x3 LB: > { %s23_s20 = sadd.s32 1, %s683_s17  ;;  %s26_s21 = sadd.s32 1, %s687_s18  ;;  %s691_s19 = sphi %s728_s19, %s14_s19   ;;  %s687_s18 = sphi %s726_s18, %s806_s18   ;;  %s683_s17 = sphi %s724_s17, %s805_s17   ;;  %s679_s16 = sphi %s722_s16, %s804_s16   ;;  %s675_s15 = sphi %s720_s15, %s803_s15  }
   0x4   : > { %p24_p0 = scmp.ge.s32.totalorder %s23_s20, 2  ;;  %p577_p1 = scmp.ge.s32.totalorder %s691_s19, 1 }
   0x5   : > { %p227_p2 = scmp.lt.s32.totalorder %s691_s19, 5 }
   0x6   : > { %s808_s20 = smov (%p24_p0, %s23_s20), 0  ;;  %s810_s21 = smov (!%p24_p0, %s26_s21), %s687_s18 }
   0x7   : > { %p228_p3 = pnand %p577_p1, %p227_p2  ;;  %p28_p4 = scmp.ge.s32.totalorder %s810_s21, 2 }
   0x8   : > { %p280_p5 = scmp.lt.s32.totalorder (!%p228_p3), %s679_s16, 1  ;;  %s291_s22 = sadd.s32 (!%p228_p3), 2, %s675_s15  ;;  %v693_v0 = vmov (!%p228_p3), 0.0   ;;  %vm694_vm0 = vmmov (!%p228_p3), 0   ;;  %vm323_vm1 = vcmask (!%p228_p3), 130048   ;;  %vm379_vm2 = vcmask (!%p228_p3), 64512  }
   0x9   : > { %s812_s21 = smov (%p28_p4, %s810_s21), 0  ;;  %231 = sbr.rel (%p228_p3) target bundleno = 778 (0x30a), region = 36 }
   0xa   : > { %595 = vmatprep.subr.bf16.mxu0 (!%p228_p3), %v693_v0  ;;  %p292_p6 = scmp.lt.s32.totalorder (!%p228_p3), %s291_s22, 5  ;;  %597 = vmatprep.mubr.msk.bf16.mxu0 (!%p228_p3), %vm694_vm0, %v693_v0  ;;  %p283_p7 = scmp.lt.s32.totalorder (!%p228_p3), %s675_s15, 5  ;;  %vm395_vm3 = vcmask (!%p228_p3), 1043456   ;;  %vm440_vm4 = vcmask (!%p228_p3), 125952  }
   0xb   : > { %601 = vmatprep.subr.bf16.mxu1 (!%p228_p3), %v693_v0  ;;  %603 = vmatprep.mubr.msk.bf16.mxu1 (!%p228_p3), %vm694_vm0, %v693_v0  ;;  %s301_s13 = sadd.s32 (!%p228_p3), 4, %s675_s15  ;;  %p311_p9 = scmp.lt.s32.totalorder (!%p228_p3), %s675_s15, 1 }
   0xc   : > { %p302_p8 = scmp.lt.s32.totalorder (!%p228_p3), %s301_s13, 5 }
  0x10   : > { %s814_s16 = smov (!%p280_p5, %s679_s16), 1  ;;  %s816_s22 = smov (!%p292_p6, %s291_s22), 5 }
  0x11   : > { %s284_s23 = scalar_select %p283_p7, %s675_s15, 5 }
  0x12   : > { %s580_s24 = sshll.u32 %s816_s22, 1  ;;  %s282_s12 = scalar_lea.vmem %s798_s0, %s814_s16 }
  0x13   : > { %s297_s25 = sadd.s32 %s580_s24, %s814_s16  ;;  %s578_s26 = sshll.u32 %s284_s23, 1  ;;  %v587_v5 = vld [vmem:[%s282_s12] ss:$0 sm:$0xff] }
  0x14   : > { %s581_s27 = sshll.u32 %s297_s25, 2  ;;  %s288_s28 = sadd.s32 %s578_s26, %s814_s16 }
  0x15   : > { %s299_s5 = scalar_lea.vmem %s800_s2, %s581_s27  ;;  %s579_s6 = sshll.u32 %s288_s28, 2 }
  0x16   : > { %v321_v1 = vld [vmem:[%s299_s5] sm:$0xf]  ;;  %s290_s9 = scalar_lea.vmem %s799_s1, %s579_s6  ;;  %s818_s13 = smov (!%p302_p8, %s301_s13), 5 }
  0x17   : > { %v328_v2 = vsel %vm323_vm1, %v321_v1, 0  ;;  %v320_v3 = vld [vmem:[%s290_s9] sm:$0xf]  ;;  %s582_s14 = sshll.u32 %s818_s13, 1  ;;  %s820_s15 = smov (!%p311_p9, %s675_s15), 1 }
  0x18   : > { %596 = vmatpush3.bf16.xpose.msra.mxu0 %v328_v2  ;;  %s307_s22 = sadd.s32 %s582_s14, %s814_s16  ;;  %s584_s27 = sshll.u32 %s820_s15, 1 }
  0x19   : > { %s583_s23 = sshll.u32 %s307_s22, 2  ;;  %s316_s28 = sadd.s32 %s584_s27, %s814_s16 }
  0x1a   : > { %s309_s26 = scalar_lea.vmem %s801_s3, %s583_s23  ;;  %s585_s29 = sshll.u32 %s316_s28, 2 }
  0x1b   : > { %v322_v17 = vld [vmem:[%s309_s26] sm:$0xf]  ;;  %s318_s6 = scalar_lea.vmem %s802_s4, %s585_s29 }
  0x1c   : > { %v397_v18 = vsel %vm395_vm3, %v322_v17, 0 }
  0x1d   : > { %602 = vmatpush3.bf16.msra.mxu1 %v397_v18 }
  0x1f   : > { %598 = vmatmul.mubr.msk.bf16.vlgmr.msra.gmra.mrb[0].mxu0 %vm323_vm1, %v320_v3 }
  0xf2   : > { %v364_v4 = vpop.f32.mrb[0].mxu0 }
  0xf3   : > { %v370_v6 = vmul.f32 0.25, %v364_v4  ;;  %v599_v7 = vpop.f32.mrb[1].mxu0 }
  0xf4   : > { %v367_v8 = vpop.f32.mrb[2].mxu0 }
  0xf5   : > { %v600_v9 = vpop.f32.mrb[3].mxu0  ;;  %v378_v10 = vadd.f32 %v587_v5, %v370_v6 }
  0xf7   : > { %v380_v11 = vsel %vm379_vm2, %v378_v10, -inf }
  0xf8   : > { %381 = vmax.xlane.f32.xlu0 %v380_v11 }
 0x185   : > { %v382_v12 = vpop.xlane.xlu0 %381 }
 0x186   : > { %v383_v13 = vsub.f32 %v378_v10, %v382_v12 }
 0x188   : > { %v384_v14 = vmul.f32 1.442695, %v383_v13 }
 0x18a   : > { %649 = vpow2.f32 %v384_v14 }
 0x194   : > { %v650_v15 = vpop.eup %649 }
 0x195   : > { %v386_v16 = vsel %vm379_vm2, %v650_v15, 0.0 }
 0x196   : > { %387 = vadd.xlane.f32.xlu0 %v386_v16 }
 0x223   : > { %v388_v19 = vpop.xlane.xlu0 %387 }
 0x224   : > { %651 = vrcp.f32 %v388_v19 }
 0x22e   : > { %v652_v20 = vpop.eup %651 }
 0x22f   : > { %v390_v21 = vmul.f32 %v652_v20, %v650_v15 }
 0x231   : > { %v391_v22 = vpack.c.bf16 %v390_v21, %v390_v21 }
 0x233   : > { %604 = vmatmul.mubr.msk.bf16.vlgmr.msra.gmra.mrb[0].mxu1 %vm379_vm2, %v391_v22 }
 0x306   : > { %v433_v23 = vpop.f32.mrb[0].mxu1 }
 0x307   : > { %v439_v24 = vpack.c.bf16 %v433_v23, %v433_v23  ;;  %v605_v25 = vpop.f32.mrb[1].mxu1 }
 0x308   : > { %v436_v26 = vpop.f32.mrb[2].mxu1 }
 0x309   : > { %441 = vst.msk [vmem:[%s318_s6] sm:$0xf] %vm440_vm4, %v439_v24  ;;  %v606_v27 = vpop.f32.mrb[3].mxu1 }
 0x30a PF: > { %s14_s19 = sadd.s32 1, %s691_s19   ;;  %s803_s15 = smov %s683_s17 }
 0x30b   : > { %p11_p10 = scmp.ge.s32.totalorder %s14_s19, 6   ;;  %s804_s16 = smov %s687_s18 }
 0x30c   : > { %s805_s17 = smov %s808_s20  ;;  %s806_s18 = smov %s812_s21 }
 0x30d   :  { %13 = sbr.rel (!%p11_p10) target bundleno = 3 (0x3), region = 75 }

// kernel: text_classifier_forward.14
= control target key start
LH: loop header
LB: loop body
LE: loop exit
PB: predicated region body
PF: predicated region fallthrough
CT: control target
= control target key end

     0   :  { %v274_v0 = vmov 0.0   ;;  %vm275_vm0 = vmmov 0   ;;  %vm52_vm1 = vcmask 130048   ;;  %vm162_vm2 = vcmask 261120   ;;  %s345_s1 = inlined_call_operand.vmem [shape: bf16[2,16,32], index: 1, kind: input, shape index: {}]   ;;  %s346_s0 = inlined_call_operand.vmem [shape: bf16[2,16,16], index: 0, kind: input, shape index: {}]   ;;  %s347_s3 = inlined_call_operand.vmem [shape: bf16[16,32], index: 3, kind: input, shape index: {}]   ;;  %s348_s2 = inlined_call_operand.vmem [shape: f32[1,32], index: 2, kind: input, shape index: {}]   ;;  %s349_s4 = inlined_call_operand.vmem [shape: f32[1,32], index: 4, kind: input, shape index: {}]   ;;  %s350_s5 = inlined_call_operand.vmem [shape: f32[1,32], index: 5, kind: input, shape index: {}]   ;;  %s351_s6 = inlined_call_operand.vmem [shape: bf16[16,32], index: 6, kind: output, shape index: {}]  }
   0x1   :  { %248 = vmatprep.subr.bf16.mxu1 %v274_v0  ;;  %254 = vmatprep.subr.bf16.mxu0 %v274_v0  ;;  %v266_v1 = vld [vmem:[%s345_s1] sm:$0xff]   ;;  %v267_v2 = vld [vmem:[%s345_s1 + $0x8] sm:$0xff]   ;;  %vm216_vm3 = vcmask 257024  }
   0x2   :  { %250 = vmatprep.mubr.msk.bf16.mxu1 %vm275_vm0, %v274_v0  ;;  %256 = vmatprep.mubr.msk.bf16.mxu0 %vm275_vm0, %v274_v0  ;;  %v268_v3 = vld [vmem:[%s346_s0] sm:$0xff]   ;;  %v269_v4 = vld [vmem:[%s346_s0 + $0x8] sm:$0xff]  }
   0x3   :  { %249 = vmatpush3.bf16.msra.mxu1 %v266_v1  ;;  %255 = vmatpush3.bf16.msra.mxu0 %v267_v2  ;;  %v241_v5 = vld [vmem:[%s347_s3] sm:$0xff]  }
   0x4   :  { %v242_v6 = vunpack.c.l.bf16 %v241_v5  ;;  %v223_v7 = vld [vmem:[%s348_s2] ss:$0 sm:$0xff]  ;;  %v243_v8 = vunpack.c.h.bf16 %v241_v5 }
   0x5   :  { %v234_v42 = vld [vmem:[%s349_s4] ss:$0 sm:$0xff] }
   0x6   :  { %251 = vmatmul.mubr.msk.bf16.vlgmr.msra.gmra.mrb[0].mxu1 %vm52_vm1, %v268_v3  ;;  %257 = vmatmul.mubr.msk.bf16.vlgmr.msra.gmra.mrb[0].mxu0 %vm52_vm1, %v269_v4  ;;  %v35_v9 = vadd.f32 %v242_v6, %v223_v7  ;;  %v36_v10 = vadd.f32 %v243_v8, %v223_v7  ;;  %v235_v44 = vld [vmem:[%s350_s5] ss:$0 sm:$0xff] }
  0xd9   :  { %v90_v11 = vpop.f32.mrb[0].mxu1  ;;  %v153_v13 = vpop.f32.mrb[0].mxu0 }
  0xda   :  { %v97_v12 = vadd.f32 %v90_v11, %v35_v9  ;;  %v252_v14 = vpop.f32.mrb[1].mxu1  ;;  %v258_v15 = vpop.f32.mrb[1].mxu0 }
  0xdb   :  { %v93_v16 = vpop.f32.mrb[2].mxu1  ;;  %v156_v19 = vpop.f32.mrb[2].mxu0 }
  0xdc   :  { %v160_v17 = vadd.f32 %v153_v13, %v97_v12  ;;  %v98_v18 = vadd.f32 %v93_v16, %v36_v10  ;;  %v253_v20 = vpop.f32.mrb[3].mxu1  ;;  %v259_v21 = vpop.f32.mrb[3].mxu0 }
  0xde   :  { %v161_v22 = vadd.f32 %v156_v19, %v98_v18  ;;  %v163_v23 = vsel %vm162_vm2, %v160_v17, 0.0 }
  0xdf   :  { %164 = vadd.xlane.f32.xlu0 %v163_v23 }
  0xe0   :  { %v166_v24 = vsel %vm162_vm2, %v161_v22, 0.0 }
  0xe3   :  { %167 = vadd.xlane.f32.xlu0 %v166_v24 }
 0x16c   :  { %v165_v25 = vpop.xlane.xlu0 %164 }
 0x16d   :  { %v170_v26 = vmul.f32 0.03125, %v165_v25 }
 0x16f   :  { %v172_v27 = vsub.f32 %v160_v17, %v170_v26 }
 0x170   :  { %v168_v28 = vpop.xlane.xlu0 %167 }
 0x171   :  { %v171_v29 = vmul.f32 0.03125, %v168_v28  ;;  %v174_v30 = vmul.f32 %v172_v27, %v172_v27 }
 0x173   :  { %v173_v31 = vsub.f32 %v161_v22, %v171_v29  ;;  %v176_v32 = vsel %vm162_vm2, %v174_v30, 0.0 }
 0x174   :  { %177 = vadd.xlane.f32.xlu1 %v176_v32 }
 0x175   :  { %v175_v33 = vmul.f32 %v173_v31, %v173_v31 }
 0x177   :  { %v179_v34 = vsel %vm162_vm2, %v175_v33, 0.0 }
 0x178   :  { %180 = vadd.xlane.f32.xlu1 %v179_v34 }
 0x201   :  { %v178_v35 = vpop.xlane.xlu1 %177 }
 0x202   :  { %v182_v36 = vmul.f32 0.03125, %v178_v35 }
 0x204   :  { %v184_v37 = vadd.f32 1e-12, %v182_v36 }
 0x205   :  { %v181_v38 = vpop.xlane.xlu1 %180 }
 0x206   :  { %270 = vrsqrt.f32 %v184_v37  ;;  %v183_v39 = vmul.f32 0.03125, %v181_v38 }
 0x208   :  { %v185_v40 = vadd.f32 1e-12, %v183_v39 }
 0x20a   :  { %272 = vrsqrt.f32 %v185_v40 }
 0x210   :  { %v271_v41 = vpop.eup %270 }
 0x211   :  { %v188_v43 = vmul.f32 %v271_v41, %v172_v27 }
 0x213   :  { %v197_v45 = vmul.f32 %v234_v42, %v188_v43 }
 0x214   :  { %v273_v46 = vpop.eup %272 }
 0x215   :  { %v206_v47 = vadd.f32 %v235_v44, %v197_v45  ;;  %v189_v48 = vmul.f32 %v273_v46, %v173_v31 }
 0x217   :  { %v238_v49 = vpack.c.bf16 %v206_v47, %v206_v47  ;;  %v198_v50 = vmul.f32 %v234_v42, %v189_v48 }
 0x219   :  { %217 = vst.msk [vmem:[%s351_s6] sm:$0xf] %vm216_vm3, %v238_v49  ;;  %v207_v51 = vadd.f32 %v235_v44, %v198_v50 }
 0x21b   :  { %v239_v52 = vpack.c.bf16 %v207_v51, %v207_v51 }
 0x21d   :  { %218 = vst.msk [vmem:[%s351_s6 + $0x4] sm:$0xf] %vm216_vm3, %v239_v52 }

// kernel: text_classifier_forward.15
= control target key start
LH: loop header
LB: loop body
LE: loop exit
PB: predicated region body
PF: predicated region fallthrough
CT: control target
= control target key end

     0   :  { %v144_v0 = vmov 0.0   ;;  %vm145_vm0 = vmmov 0   ;;  %vm45_vm1 = vcmask 261120   ;;  %vm108_vm2 = vcmask 519168   ;;  %s184_s1 = inlined_call_operand.vmem [shape: bf16[32,64], index: 1, kind: input, shape index: {}]   ;;  %s185_s0 = inlined_call_operand.vmem [shape: bf16[16,32], index: 0, kind: input, shape index: {}]   ;;  %s186_s2 = inlined_call_operand.vmem [shape: f32[1,64], index: 2, kind: input, shape index: {}]   ;;  %s187_s3 = inlined_call_operand.vmem [shape: bf16[16,64], index: 3, kind: output, shape index: {}]  }
   0x1   :  { %127 = vmatprep.subr.bf16.mxu0 %v144_v0  ;;  %v137_v1 = vld [vmem:[%s184_s1] sm:$0xff]   ;;  %131 = vmatprep.mubr.msk.bf16.mxu0 %vm145_vm0, %v144_v0  ;;  %v138_v2 = vld [vmem:[%s184_s1 + $0x8] sm:$0xff]  }
   0x2   :  { %128 = vmatpush3.bf16.msra.mxu0 %v137_v1  ;;  %v139_v3 = vld [vmem:[%s185_s0] sm:$0xff]  }
   0x3   :  { %129 = vmatprep.subr.bf16.mxu0 %v144_v0  ;;  %v115_v4 = vld [vmem:[%s186_s2] ss:$0 sm:$0xff] }
   0x6   :  { %130 = vmatpush3.bf16.msra.mxu0 %v138_v2 }
   0x9   :  { %132 = vmatmul.mubr.msk.bf16.vlgmr.msra.gmra.mrb[0].mxu0 %vm45_vm1, %v139_v3 }
  0xdc   :  { %v83_v5 = vpop.f32.mrb[0].mxu0 }
  0xdd   :  { %v84_v6 = vadd.f32 %v115_v4, %v83_v5  ;;  %v133_v7 = vpop.f32.mrb[1].mxu0 }
  0xde   :  { %v86_v8 = vpop.f32.mrb[2].mxu0 }
  0xdf   :  { %v92_v9 = vmul.f32 0.70710677, %v84_v6  ;;  %v87_v10 = vadd.f32 %v115_v4, %v86_v8  ;;  %v134_v11 = vpop.f32.mrb[3].mxu0  ;;  %v90_v14 = vmul.f32 0.5, %v84_v6 }
  0xe1   :  { %140 = verf.f32 %v92_v9  ;;  %v93_v12 = vmul.f32 0.70710677, %v87_v10  ;;  %v91_v18 = vmul.f32 0.5, %v87_v10 }
  0xe3   :  { %142 = verf.f32 %v93_v12 }
  0xeb   :  { %v141_v13 = vpop.eup %140 }
  0xec   :  { %v96_v15 = vadd.f32 1.0, %v141_v13 }
  0xed   :  { %v143_v16 = vpop.eup %142 }
  0xee   :  { %v98_v17 = vmul.f32 %v96_v15, %v90_v14  ;;  %v97_v19 = vadd.f32 1.0, %v143_v16 }
  0xf0   :  { %v122_v20 = vpack.c.bf16 %v98_v17, %v98_v17  ;;  %v99_v21 = vmul.f32 %v97_v19, %v91_v18 }
  0xf2   :  { %109 = vst.msk [vmem:[%s187_s3] sm:$0xf] %vm108_vm2, %v122_v20  ;;  %v123_v22 = vpack.c.bf16 %v99_v21, %v99_v21 }
  0xf4   :  { %110 = vst.msk [vmem:[%s187_s3 + $0x4] sm:$0xf] %vm108_vm2, %v123_v22 }

// kernel: text_classifier_forward.16
= control target key start
LH: loop header
LB: loop body
LE: loop exit
PB: predicated region body
PF: predicated region fallthrough
CT: control target
= control target key end

     0   :  { %v229_v0 = vmov 0.0   ;;  %vm230_vm0 = vmmov 0   ;;  %vm76_vm1 = vcmask 523264   ;;  %vm123_vm2 = vcmask 261120   ;;  %s303_s1 = inlined_call_operand.vmem [shape: bf16[1,64,32], index: 1, kind: input, shape index: {}]   ;;  %s304_s0 = inlined_call_operand.vmem [shape: bf16[1,16,64], index: 0, kind: input, shape index: {}]   ;;  %s305_s3 = inlined_call_operand.vmem [shape: bf16[16,32], index: 3, kind: input, shape index: {}]   ;;  %s306_s2 = inlined_call_operand.vmem [shape: f32[1,32], index: 2, kind: input, shape index: {}]   ;;  %s307_s4 = inlined_call_operand.vmem [shape: f32[1,32], index: 4, kind: input, shape index: {}]   ;;  %s308_s5 = inlined_call_operand.vmem [shape: f32[1,32], index: 5, kind: input, shape index: {}]   ;;  %s309_s6 = inlined_call_operand.vmem [shape: bf16[16,32], index: 6, kind: output, shape index: {}]  }
   0x1   :  { %206 = vmatprep.subr.bf16.mxu0 %v229_v0  ;;  %v220_v1 = vld [vmem:[%s303_s1] sm:$0xff]   ;;  %214 = vmatprep.mubr.msk.bf16.mxu0 %vm230_vm0, %v229_v0  ;;  %v221_v2 = vld [vmem:[%s303_s1 + $0x8] sm:$0xff]   ;;  %v222_v3 = vld [vmem:[%s303_s1 + $0x10] sm:$0xff]   ;;  %vm177_vm3 = vcmask 257024  }
   0x2   :  { %207 = vmatpush3.bf16.msra.mxu0 %v220_v1  ;;  %v223_v4 = vld [vmem:[%s303_s1 + $0x18] sm:$0xff]   ;;  %v224_v5 = vld [vmem:[%s304_s0] sm:$0xff]  }
   0x3   :  { %208 = vmatprep.subr.bf16.mxu0 %v229_v0  ;;  %v198_v6 = vld [vmem:[%s305_s3] sm:$0xff]  }
   0x4   :  { %v199_v7 = vunpack.c.l.bf16 %v198_v6  ;;  %v184_v8 = vld [vmem:[%s306_s2] ss:$0 sm:$0xff]  ;;  %v200_v9 = vunpack.c.h.bf16 %v198_v6 }
   0x5   :  { %v191_v37 = vld [vmem:[%s307_s4] ss:$0 sm:$0xff] }
   0x6   :  { %209 = vmatpush3.bf16.msra.mxu0 %v221_v2  ;;  %v35_v10 = vadd.f32 %v199_v7, %v184_v8  ;;  %v36_v11 = vadd.f32 %v200_v9, %v184_v8  ;;  %v192_v39 = vld [vmem:[%s308_s5] ss:$0 sm:$0xff] }
   0x7   :  { %210 = vmatprep.subr.bf16.mxu0 %v229_v0 }
   0xa   :  { %211 = vmatpush3.bf16.msra.mxu0 %v222_v3 }
   0xb   :  { %212 = vmatprep.subr.bf16.mxu0 %v229_v0 }
   0xe   :  { %213 = vmatpush3.bf16.msra.mxu0 %v223_v4 }
  0x11   :  { %215 = vmatmul.mubr.msk.bf16.vlgmr.msra.gmra.mrb[0].mxu0 %vm76_vm1, %v224_v5 }
  0xe4   :  { %v114_v12 = vpop.f32.mrb[0].mxu0 }
  0xe5   :  { %v121_v13 = vadd.f32 %v114_v12, %v35_v10  ;;  %v216_v14 = vpop.f32.mrb[1].mxu0 }
  0xe6   :  { %v117_v15 = vpop.f32.mrb[2].mxu0 }
  0xe7   :  { %v122_v16 = vadd.f32 %v117_v15, %v36_v11  ;;  %v217_v17 = vpop.f32.mrb[3].mxu0  ;;  %v124_v18 = vsel %vm123_vm2, %v121_v13, 0.0 }
  0xe8   :  { %125 = vadd.xlane.f32.xlu0 %v124_v18 }
  0xe9   :  { %v127_v19 = vsel %vm123_vm2, %v122_v16, 0.0 }
  0xec   :  { %128 = vadd.xlane.f32.xlu0 %v127_v19 }
 0x175   :  { %v126_v20 = vpop.xlane.xlu0 %125 }
 0x176   :  { %v131_v21 = vmul.f32 0.03125, %v126_v20 }
 0x178   :  { %v133_v22 = vsub.f32 %v121_v13, %v131_v21 }
 0x179   :  { %v129_v23 = vpop.xlane.xlu0 %128 }
 0x17a   :  { %v132_v24 = vmul.f32 0.03125, %v129_v23  ;;  %v135_v25 = vmul.f32 %v133_v22, %v133_v22 }
 0x17c   :  { %v134_v26 = vsub.f32 %v122_v16, %v132_v24  ;;  %v137_v27 = vsel %vm123_vm2, %v135_v25, 0.0 }
 0x17d   :  { %138 = vadd.xlane.f32.xlu1 %v137_v27 }
 0x17e   :  { %v136_v28 = vmul.f32 %v134_v26, %v134_v26 }
 0x180   :  { %v140_v29 = vsel %vm123_vm2, %v136_v28, 0.0 }
 0x181   :  { %141 = vadd.xlane.f32.xlu1 %v140_v29 }
 0x20a   :  { %v139_v30 = vpop.xlane.xlu1 %138 }
 0x20b   :  { %v143_v31 = vmul.f32 0.03125, %v139_v30 }
 0x20d   :  { %v145_v32 = vadd.f32 1e-12, %v143_v31 }
 0x20e   :  { %v142_v33 = vpop.xlane.xlu1 %141 }
 0x20f   :  { %225 = vrsqrt.f32 %v145_v32  ;;  %v144_v34 = vmul.f32 0.03125, %v142_v33 }
 0x211   :  { %v146_v35 = vadd.f32 1e-12, %v144_v34 }
 0x213   :  { %227 = vrsqrt.f32 %v146_v35 }
 0x219   :  { %v226_v36 = vpop.eup %225 }
 0x21a   :  { %v149_v38 = vmul.f32 %v226_v36, %v133_v22 }
 0x21c   :  { %v158_v40 = vmul.f32 %v191_v37, %v149_v38 }
 0x21d   :  { %v228_v41 = vpop.eup %227 }
 0x21e   :  { %v167_v42 = vadd.f32 %v192_v39, %v158_v40  ;;  %v150_v43 = vmul.f32 %v228_v41, %v134_v26 }
 0x220   :  { %v195_v44 = vpack.c.bf16 %v167_v42, %v167_v42  ;;  %v159_v45 = vmul.f32 %v191_v37, %v150_v43 }
 0x222   :  { %178 = vst.msk [vmem:[%s309_s6] sm:$0xf] %vm177_vm3, %v195_v44  ;;  %v168_v46 = vadd.f32 %v192_v39, %v159_v45 }
 0x224   :  { %v196_v47 = vpack.c.bf16 %v168_v46, %v168_v46 }
 0x226   :  { %179 = vst.msk [vmem:[%s309_s6 + $0x4] sm:$0xf] %vm177_vm3, %v196_v47 }

</bundles_post_ra>
